<compile_context>
chip_gen: v7x
topology: tpu7x:2x2x1
jax: 0.10.0
libtpu: 0.0.40
codegen_flags: <defaults>
</compile_context>

<pallas_src>
import functools
import math

import jax
import jax.numpy as jnp
from jax.experimental import pallas as pl
from jax.experimental.pallas import tpu as pltpu

VOCAB = 13          # len(TOKEN2IDX)
VOCAB_PAD = 128     # lane-dense logits slab; sliced back to 13 outside kernel
EMB_ROWS = 16       # token-embedding rows padded 13 -> 16 (sublane multiple)

CFG = dict(
    dec_dim_in=32,
    dim_proj_QK=16,
    dim_proj_V=16,
    dec_dim_out=16,
    dec_mask_num_heads=2,
    dec_cross_num_heads=2,
    num_decoders=2,
    max_seq_len=8,
)

# ----------------------- packed bias-slab block layout ---------------------- #
NB = 13  # bias blocks per layer
(B_MQKV, B_MO, B_N1G, B_N1B, B_CQ, B_CKV, B_CO, B_N2G, B_N2B,
 B_F1, B_F2, B_N3G, B_N3B) = range(NB)
# extra (non per-layer) blocks appended after the L*NB layer blocks
X_POS, X_LOGB, X_SMASK, X_CMASK = range(4)


def _rup(x, m):
    return (x + m - 1) // m * m


# ------------------------------- fused kernel ------------------------------- #
def decoder_fwd_kernel(tok_ref, wemb_ref, enc_ref, w1_ref, w2_ref, fb_ref,
                       out_ref, *, cfg, B, T, S, L, BR):
    D = cfg['dec_dim_in']
    dqk = cfg['dim_proj_QK']
    dv = cfg['dim_proj_V']
    Hm = cfg['dec_mask_num_heads']
    Hc = cfg['dec_cross_num_heads']
    BT = B * T
    BSp = enc_ref.shape[0]
    bf16 = jnp.bfloat16
    f32 = jnp.float32
    scale = 1.0 / math.sqrt(dqk)

    mqkv_w = 2 * Hm * dqk + Hm * dv      # 96
    ckv_w = Hc * dqk + Hc * dv           # 64

    def fb(block, rows, width):          # pre-broadcast rows, static slice
        base = block * BR
        return fb_ref[base:base + rows, :width]

    def lfb(l, b, rows, width):
        return fb(l * NB + b, rows, width)

    def xfb(x, rows, width):
        return fb(L * NB + x, rows, width)

    def layernorm(v, g, b, eps=1e-5):
        mu = jnp.mean(v, axis=-1, keepdims=True)
        c = v - mu
        var = jnp.mean(c * c, axis=-1, keepdims=True)
        return c * jax.lax.rsqrt(var + eps) * g + b

    def attend(Qh, Kh, Vh, amask):
        # Q @ K^T as a contraction over the last dim of both (no transpose op)
        s = jax.lax.dot_general(Qh.astype(bf16), Kh.astype(bf16),
                                (((1,), (1,)), ((), ())),
                                preferred_element_type=f32) * scale + amask
        m = jnp.max(s, axis=-1, keepdims=True)
        e = jnp.exp(s - m)
        p = e * pl.reciprocal(jnp.sum(e, axis=-1, keepdims=True), approx=True)
        # TODO(synk): attention-weight dropout (p=0.1) skipped (eval mode).
        return jnp.dot(p.astype(bf16), Vh.astype(bf16),
                       preferred_element_type=f32)

    # ---------------- token + positional embedding -------------------------- #
    tok = tok_ref[...]                                            # (BT, 1) int32
    onehot = (jax.lax.broadcasted_iota(jnp.int32, (BT, EMB_ROWS), 1)
              == tok).astype(bf16)
    temb = wemb_ref[0:EMB_ROWS, :D]                               # bf16
    x = jnp.dot(onehot, temb, preferred_element_type=f32)         # (BT, D)
    x = x + xfb(X_POS, BT, D)                                     # pre-tiled pos

    enc = enc_ref[...]                                            # (BSp, D) bf16
    self_mask = xfb(X_SMASK, BT, BT)                              # additive f32
    cross_mask = xfb(X_CMASK, BT, BSp)

    for l in range(L):                   # static unroll over decoder blocks
        W1 = w1_ref[l]                   # (3D, 128) bf16
        W2 = w2_ref[l]                   # (Hm*dv + Hc*dv + 4D, D) bf16

        # ---- masked (causal) self-attention: fused QKV projection ---------- #
        qkv = (jnp.dot(x.astype(bf16), W1[0:D, 0:mqkv_w],
                       preferred_element_type=f32)
               + lfb(l, B_MQKV, BT, mqkv_w))
        heads = []
        for h in range(Hm):
            Qh = qkv[:, h * dqk:(h + 1) * dqk]
            Kh = qkv[:, Hm * dqk + h * dqk:Hm * dqk + (h + 1) * dqk]
            Vh = qkv[:, 2 * Hm * dqk + h * dv:2 * Hm * dqk + (h + 1) * dv]
            heads.append(attend(Qh, Kh, Vh, self_mask))
        attn = jnp.concatenate(heads, axis=-1)                    # (BT, Hm*dv)
        proj = (jnp.dot(attn.astype(bf16), W2[0:Hm * dv, :D],     # Wh∘Wout fused
                        preferred_element_type=f32)
                + lfb(l, B_MO, BT, D))
        x1 = layernorm(x + proj, lfb(l, B_N1G, BT, D), lfb(l, B_N1B, BT, D))

        # ---- cross attention over encoder: fused KV projection ------------- #
        Qc = (jnp.dot(x1.astype(bf16), W1[D:2 * D, 0:Hc * dqk],
                      preferred_element_type=f32)
              + lfb(l, B_CQ, BT, Hc * dqk))
        KV = (jnp.dot(enc, W1[D:2 * D, Hc * dqk:Hc * dqk + ckv_w],
                      preferred_element_type=f32)
              + lfb(l, B_CKV, BSp, ckv_w))
        heads = []
        for h in range(Hc):
            Qh = Qc[:, h * dqk:(h + 1) * dqk]
            Kh = KV[:, h * dqk:(h + 1) * dqk]
            Vh = KV[:, Hc * dqk + h * dv:Hc * dqk + (h + 1) * dv]
            heads.append(attend(Qh, Kh, Vh, cross_mask))
        attn = jnp.concatenate(heads, axis=-1)
        proj = (jnp.dot(attn.astype(bf16),
                        W2[Hm * dv:Hm * dv + Hc * dv, :D],
                        preferred_element_type=f32)
                + lfb(l, B_CO, BT, D))
        x2 = layernorm(x1 + proj, lfb(l, B_N2G, BT, D), lfb(l, B_N2B, BT, D))

        # --------------------------------- FFN ------------------------------ #
        h1 = jnp.maximum(
            jnp.dot(x2.astype(bf16), W1[2 * D:3 * D, 0:4 * D],
                    preferred_element_type=f32) + lfb(l, B_F1, BT, 4 * D), 0.0)
        ff = (jnp.dot(h1.astype(bf16),
                      W2[Hm * dv + Hc * dv:Hm * dv + Hc * dv + 4 * D, :D],
                      preferred_element_type=f32)
              + lfb(l, B_F2, BT, D))
        x = layernorm(x2 + ff, lfb(l, B_N3G, BT, D), lfb(l, B_N3B, BT, D))

    # ------------------------------ logits head ------------------------------ #
    logw = wemb_ref[EMB_ROWS:EMB_ROWS + D, :VOCAB_PAD]            # bf16
    out_ref[...] = (jnp.dot(x.astype(bf16), logw,
                            preferred_element_type=f32)
                    + xfb(X_LOGB, BT, VOCAB_PAD))


# --------------------------- raw (PyTorch-style) init ----------------------- #
def init_raw_params(key, cfg):
    """Parameters in the original per-head structure, stored (in, out): y = x @ W + b."""
    D = cfg['dec_dim_in']
    dqk = cfg['dim_proj_QK']
    dv = cfg['dim_proj_V']
    dout = cfg['dec_dim_out']
    Hm = cfg['dec_mask_num_heads']
    Hc = cfg['dec_cross_num_heads']
    L = cfg['num_decoders']

    keys = iter(jax.random.split(key, 256))

    def nrm(shape, scale=0.05):
        return (scale * jax.random.normal(next(keys), shape)).astype(jnp.float32)

    def head():
        return dict(Wq=nrm((D, dqk)), bq=nrm((dqk,)),
                    Wk=nrm((D, dqk)), bk=nrm((dqk,)),
                    Wv=nrm((D, dv)), bv=nrm((dv,)),
                    Wh=nrm((dv, dout)), bh=nrm((dout,)))

    def block():
        return dict(
            mask_heads=[head() for _ in range(Hm)],
            mask_Wout=nrm((Hm * dout, D)), mask_bout=nrm((D,)),
            norm1_g=jnp.ones((D,), jnp.float32), norm1_b=jnp.zeros((D,), jnp.float32),
            cross_heads=[head() for _ in range(Hc)],
            cross_Wout=nrm((Hc * dout, D)), cross_bout=nrm((D,)),
            norm2_g=jnp.ones((D,), jnp.float32), norm2_b=jnp.zeros((D,), jnp.float32),
            ffn_W1=nrm((D, 4 * D)), ffn_b1=nrm((4 * D,)),
            ffn_W2=nrm((4 * D, D)), ffn_b2=nrm((D,)),
            norm3_g=jnp.ones((D,), jnp.float32), norm3_b=jnp.zeros((D,), jnp.float32),
        )

    return dict(
        token_emb=nrm((VOCAB, D)),
        pos_emb=nrm((cfg['max_seq_len'], D)),
        to_logits_w=nrm((D, VOCAB)),
        to_logits_b=jnp.zeros((VOCAB,), jnp.float32),
        blocks=[block() for _ in range(L)],
    )


# ------------------------- exact fuse + pack to slabs ------------------------ #
def _fuse_attention(heads, Wout, bout, dout):
    """Stack heads; pre-compose per-head W_h with the out-projection (exact)."""
    Wq = jnp.concatenate([h['Wq'] for h in heads], axis=1)
    bq = jnp.concatenate([h['bq'] for h in heads], axis=0)
    Wk = jnp.concatenate([h['Wk'] for h in heads], axis=1)
    bk = jnp.concatenate([h['bk'] for h in heads], axis=0)
    Wv = jnp.concatenate([h['Wv'] for h in heads], axis=1)
    bv = jnp.concatenate([h['bv'] for h in heads], axis=0)
    Wo_rows, bo = [], bout
    for i, h in enumerate(heads):
        Wout_h = Wout[i * dout:(i + 1) * dout, :]       # (dout, D) row-split
        Wo_rows.append(h['Wh'] @ Wout_h)                # (dv, D)
        bo = bo + h['bh'] @ Wout_h
    return Wq, bq, Wk, bk, Wv, bv, jnp.concatenate(Wo_rows, axis=0), bo


def pack_params(raw, cfg, B, S):
    D = cfg['dec_dim_in']
    dqk = cfg['dim_proj_QK']
    dv = cfg['dim_proj_V']
    dout = cfg['dec_dim_out']
    Hm = cfg['dec_mask_num_heads']
    Hc = cfg['dec_cross_num_heads']
    L = cfg['num_decoders']
    T = cfg['max_seq_len']

    BT = B * T
    BS = B * S
    BSp = _rup(BS, 8)
    BR = max(_rup(BT, 8), BSp)          # rows per pre-broadcast bias block

    w1 = jnp.zeros((L, 3 * D, 128), jnp.float32)
    w2 = jnp.zeros((L, Hm * dv + Hc * dv + 4 * D, D), jnp.float32)
    fb = jnp.zeros(((L * NB + 4) * BR, 128), jnp.float32)

    def set_bias(fbuf, block, vec):
        base = block * BR
        v = jnp.asarray(vec, jnp.float32).reshape(1, -1)
        return fbuf.at[base:base + BR, :v.shape[1]].set(
            jnp.broadcast_to(v, (BR, v.shape[1])))

    for l, blk in enumerate(raw['blocks']):
        mWq, mbq, mWk, mbk, mWv, mbv, mWo, mbo = _fuse_attention(
            blk['mask_heads'], blk['mask_Wout'], blk['mask_bout'], dout)
        cWq, cbq, cWk, cbk, cWv, cbv, cWo, cbo = _fuse_attention(
            blk['cross_heads'], blk['cross_Wout'], blk['cross_bout'], dout)

        # W1: row block 0 = [mWq|mWk|mWv], row block 1 = [cWq|cWk|cWv], row block 2 = ffn_W1
        w1 = w1.at[l, 0:D, 0:Hm * dqk].set(mWq)
        w1 = w1.at[l, 0:D, Hm * dqk:2 * Hm * dqk].set(mWk)
        w1 = w1.at[l, 0:D, 2 * Hm * dqk:2 * Hm * dqk + Hm * dv].set(mWv)
        w1 = w1.at[l, D:2 * D, 0:Hc * dqk].set(cWq)
        w1 = w1.at[l, D:2 * D, Hc * dqk:2 * Hc * dqk].set(cWk)
        w1 = w1.at[l, D:2 * D, 2 * Hc * dqk:2 * Hc * dqk + Hc * dv].set(cWv)
        w1 = w1.at[l, 2 * D:3 * D, 0:4 * D].set(blk['ffn_W1'])

        # W2: [mWo ; cWo ; ffn_W2]
        w2 = w2.at[l, 0:Hm * dv, :].set(mWo)
        w2 = w2.at[l, Hm * dv:Hm * dv + Hc * dv, :].set(cWo)
        w2 = w2.at[l, Hm * dv + Hc * dv:, :].set(blk['ffn_W2'])

        base = l * NB
        fb = set_bias(fb, base + B_MQKV, jnp.concatenate([mbq, mbk, mbv]))
        fb = set_bias(fb, base + B_MO, mbo)
        fb = set_bias(fb, base + B_N1G, blk['norm1_g'])
        fb = set_bias(fb, base + B_N1B, blk['norm1_b'])
        fb = set_bias(fb, base + B_CQ, cbq)
        fb = set_bias(fb, base + B_CKV, jnp.concatenate([cbk, cbv]))
        fb = set_bias(fb, base + B_CO, cbo)
        fb = set_bias(fb, base + B_N2G, blk['norm2_g'])
        fb = set_bias(fb, base + B_N2B, blk['norm2_b'])
        fb = set_bias(fb, base + B_F1, blk['ffn_b1'])
        fb = set_bias(fb, base + B_F2, blk['ffn_b2'])
        fb = set_bias(fb, base + B_N3G, blk['norm3_g'])
        fb = set_bias(fb, base + B_N3B, blk['norm3_b'])

    # positional embedding pre-tiled over batch
    pos = jnp.tile(raw['pos_emb'], (B, 1))                          # (BT, D)
    base = (L * NB + X_POS) * BR
    fb = fb.at[base:base + BT, :D].set(pos)

    # logits bias (padded to VOCAB_PAD lanes)
    logb = jnp.zeros((VOCAB_PAD,), jnp.float32).at[:VOCAB].set(raw['to_logits_b'])
    fb = set_bias(fb, L * NB + X_LOGB, logb)

    # additive attention masks (block-diagonal over batch, causal for self-attn)
    q = jnp.arange(BT)[:, None]
    k = jnp.arange(BT)[None, :]
    self_invalid = jnp.logical_or((q // T) != (k // T), (k % T) > (q % T))
    smask = jnp.where(self_invalid, jnp.float32(-1e30), jnp.float32(0.0))
    base = (L * NB + X_SMASK) * BR
    fb = fb.at[base:base + BT, :BT].set(smask)

    kk = jnp.arange(BSp)[None, :]
    lo = (q // T) * S
    cross_invalid = jnp.logical_or(kk < lo, kk >= lo + S)   # also masks pad rows
    cmask = jnp.where(cross_invalid, jnp.float32(-1e30), jnp.float32(0.0))
    base = (L * NB + X_CMASK) * BR
    fb = fb.at[base:base + BT, :BSp].set(cmask)

    # token embedding + logits weight slab (bf16)
    wemb = jnp.zeros((EMB_ROWS + D, 128), jnp.float32)
    wemb = wemb.at[0:VOCAB, 0:D].set(raw['token_emb'])
    wemb = wemb.at[EMB_ROWS:EMB_ROWS + D, 0:VOCAB].set(raw['to_logits_w'])

    return dict(wemb=wemb.astype(jnp.bfloat16),
                w1=w1.astype(jnp.bfloat16),
                w2=w2.astype(jnp.bfloat16),
                fbias=fb, BR=BR, BSp=BSp)


# ------------------------------- full forward -------------------------------- #
def transformer_decoder_forward(tokens, enc_out, packed, cfg=CFG):
    B, T = tokens.shape
    assert T == cfg['max_seq_len'], "module assumes T == max_seq_len"
    Be, S, D = enc_out.shape
    assert Be == B and D == cfg['dec_dim_in']
    L = cfg['num_decoders']
    BT = B * T
    BSp = packed['BSp']
    BR = packed['BR']

    # flatten + pad encoder output to a 2-D sublane-aligned bf16 slab
    enc = enc_out.reshape(B * S, D)
    enc = jnp.zeros((BSp, D), jnp.float32).at[:B * S].set(enc).astype(jnp.bfloat16)

    kernel = functools.partial(decoder_fwd_kernel, cfg=cfg, B=B, T=T, S=S, L=L, BR=BR)

    args = (tokens.reshape(BT, 1).astype(jnp.int32),
            packed['wemb'], enc, packed['w1'], packed['w2'], packed['fbias'])

    out = pl.pallas_call(
        kernel,
        out_shape=jax.ShapeDtypeStruct((BT, VOCAB_PAD), jnp.float32),
        in_specs=[pl.BlockSpec(memory_space=pltpu.MemorySpace.VMEM)] * len(args),
        out_specs=pl.BlockSpec(memory_space=pltpu.MemorySpace.VMEM),
    )(*args)

    return out[:, :VOCAB].reshape(B, T, VOCAB)


if __name__ == "__main__":
    key = jax.random.PRNGKey(0)
    k_tok, k_enc, k_par = jax.random.split(key, 3)

    B = 2
    T = CFG['max_seq_len']   # decoder seq len (== max_seq_len, as in PyTorch forward)
    S = 9                    # P=8 image patches + 1 CLS token
    D = CFG['dec_dim_in']

    tokens = jax.random.randint(k_tok, (B, T), 0, VOCAB, dtype=jnp.int32)
    enc_out = jax.random.normal(k_enc, (B, S, D), dtype=jnp.float32)
    raw = init_raw_params(k_par, CFG)
    packed = pack_params(raw, CFG, B=B, S=S)

    fwd = jax.jit(functools.partial(transformer_decoder_forward, packed=packed, cfg=CFG))
    logits = jax.block_until_ready(fwd(tokens, enc_out))

    assert logits.shape == (B, T, VOCAB), logits.shape
    assert bool(jnp.all(jnp.isfinite(logits)))
    print("KERNEL_OK")
</pallas_src>

<mosaic_0001>
module attributes {stable_mosaic.version = 11 : i64} {
  func.func @decoder_fwd_kernel(%arg0: memref<16x1xi32, #tpu.memory_space<vmem>>, %arg1: memref<48x128xbf16, #tpu.memory_space<vmem>>, %arg2: memref<24x32xbf16, #tpu.memory_space<vmem>>, %arg3: memref<2x96x128xbf16, #tpu.memory_space<vmem>>, %arg4: memref<2x192x32xbf16, #tpu.memory_space<vmem>>, %arg5: memref<720x128xf32, #tpu.memory_space<vmem>>, %arg6: memref<16x128xf32, #tpu.memory_space<vmem>>) attributes {dimension_semantics = [], scalar_prefetch = 0 : i64, scratch_operands = 0 : i64, tpu.core_type = #tpu.core_type<tc>} {
    %c0 = arith.constant 0 : index
    %c0_0 = arith.constant 0 : index
    %0 = vector.load %arg0[%c0, %c0_0] : memref<16x1xi32, #tpu.memory_space<vmem>>, vector<16x1xi32>
    %1 = tpu.iota {dimensions = array<i32: 1>} : vector<16x16xi32>
    %2 = vector.broadcast %0 : vector<16x1xi32> to vector<16x16xi32>
    %3 = arith.cmpi eq, %1, %2 : vector<16x16xi32>
    %4 = arith.extui %3 : vector<16x16xi1> to vector<16x16xi32>
    %5 = arith.sitofp %4 : vector<16x16xi32> to vector<16x16xf32>
    %6 = arith.truncf %5 : vector<16x16xf32> to vector<16x16xbf16>
    %c0_1 = arith.constant 0 : index
    %c0_2 = arith.constant 0 : index
    %7 = vector.load %arg1[%c0_1, %c0_2] : memref<48x128xbf16, #tpu.memory_space<vmem>>, vector<16x32xbf16>
    %cst = arith.constant dense<0.000000e+00> : vector<16x32xf32>
    %8 = tpu.matmul %6, %7, %cst {dimension_numbers = #tpu.dot_dimension_numbers<[1], [0], [0], [1], [0, 0, 1, 1], [], []>} : vector<16x16xbf16>, vector<16x32xbf16>, vector<16x32xf32> -> vector<16x32xf32>
    %c624 = arith.constant 624 : index
    %c0_3 = arith.constant 0 : index
    %9 = vector.load %arg5[%c624, %c0_3] : memref<720x128xf32, #tpu.memory_space<vmem>>, vector<16x32xf32>
    %10 = arith.addf %8, %9 : vector<16x32xf32>
    %c0_4 = arith.constant 0 : index
    %c0_5 = arith.constant 0 : index
    %11 = vector.load %arg2[%c0_4, %c0_5] : memref<24x32xbf16, #tpu.memory_space<vmem>>, vector<24x32xbf16>
    %c672 = arith.constant 672 : index
    %c0_6 = arith.constant 0 : index
    %12 = vector.load %arg5[%c672, %c0_6] : memref<720x128xf32, #tpu.memory_space<vmem>>, vector<16x16xf32>
    %c696 = arith.constant 696 : index
    %c0_7 = arith.constant 0 : index
    %13 = vector.load %arg5[%c696, %c0_7] : memref<720x128xf32, #tpu.memory_space<vmem>>, vector<16x24xf32>
    %c0_8 = arith.constant 0 : index
    %c0_9 = arith.constant 0 : index
    %c0_10 = arith.constant 0 : index
    %14 = vector.load %arg3[%c0_8, %c0_9, %c0_10] : memref<2x96x128xbf16, #tpu.memory_space<vmem>>, vector<1x96x128xbf16>
    %15 = vector.shape_cast %14 : vector<1x96x128xbf16> to vector<96x128xbf16>
    %c0_11 = arith.constant 0 : index
    %c0_12 = arith.constant 0 : index
    %c0_13 = arith.constant 0 : index
    %16 = vector.load %arg4[%c0_11, %c0_12, %c0_13] : memref<2x192x32xbf16, #tpu.memory_space<vmem>>, vector<1x192x32xbf16>
    %17 = vector.shape_cast %16 : vector<1x192x32xbf16> to vector<192x32xbf16>
    %18 = arith.truncf %10 : vector<16x32xf32> to vector<16x32xbf16>
    %19 = vector.extract_strided_slice %15 {offsets = [0, 0], sizes = [32, 96], strides = [1, 1]} : vector<96x128xbf16> to vector<32x96xbf16>
    %cst_14 = arith.constant dense<0.000000e+00> : vector<16x96xf32>
    %20 = tpu.matmul %18, %19, %cst_14 {dimension_numbers = #tpu.dot_dimension_numbers<[1], [0], [0], [1], [0, 0, 1, 1], [], []>} : vector<16x32xbf16>, vector<32x96xbf16>, vector<16x96xf32> -> vector<16x96xf32>
    %c0_15 = arith.constant 0 : index
    %c0_16 = arith.constant 0 : index
    %21 = vector.load %arg5[%c0_15, %c0_16] : memref<720x128xf32, #tpu.memory_space<vmem>>, vector<16x96xf32>
    %22 = arith.addf %20, %21 : vector<16x96xf32>
    %23 = vector.extract_strided_slice %22 {offsets = [0, 0], sizes = [16, 16], strides = [1, 1]} : vector<16x96xf32> to vector<16x16xf32>
    %24 = vector.extract_strided_slice %22 {offsets = [0, 32], sizes = [16, 16], strides = [1, 1]} : vector<16x96xf32> to vector<16x16xf32>
    %25 = vector.extract_strided_slice %22 {offsets = [0, 64], sizes = [16, 16], strides = [1, 1]} : vector<16x96xf32> to vector<16x16xf32>
    %26 = arith.truncf %23 : vector<16x16xf32> to vector<16x16xbf16>
    %27 = arith.truncf %24 : vector<16x16xf32> to vector<16x16xbf16>
    %cst_17 = arith.constant dense<0.000000e+00> : vector<16x16xf32>
    %28 = tpu.matmul %26, %27, %cst_17 {dimension_numbers = #tpu.dot_dimension_numbers<[1], [1], [0], [0], [0, 0, 1, 0], [], []>} : vector<16x16xbf16>, vector<16x16xbf16>, vector<16x16xf32> -> vector<16x16xf32>
    %cst_18 = arith.constant 2.500000e-01 : f32
    %29 = vector.broadcast %cst_18 : f32 to vector<16x16xf32>
    %30 = arith.mulf %28, %29 : vector<16x16xf32>
    %31 = arith.addf %30, %12 : vector<16x16xf32>
    %cst_19 = arith.constant dense<0xFF800000> : vector<16xf32>
    %32 = vector.multi_reduction <maximumf>, %31, %cst_19 [1] : vector<16x16xf32> to vector<16xf32>
    %33 = vector.shape_cast %32 : vector<16xf32> to vector<16x1xf32>
    %34 = vector.broadcast %33 : vector<16x1xf32> to vector<16x16xf32>
    %35 = arith.subf %31, %34 : vector<16x16xf32>
    %36 = math.exp %35 : vector<16x16xf32>
    %cst_20 = arith.constant dense<0.000000e+00> : vector<16xf32>
    %37 = vector.multi_reduction <add>, %36, %cst_20 [1] : vector<16x16xf32> to vector<16xf32>
    %38 = vector.shape_cast %37 : vector<16xf32> to vector<16x1xf32>
    %39 = tpu.reciprocal %38 {approx = true} : vector<16x1xf32> -> vector<16x1xf32>
    %40 = vector.broadcast %39 : vector<16x1xf32> to vector<16x16xf32>
    %41 = arith.mulf %36, %40 : vector<16x16xf32>
    %42 = arith.truncf %41 : vector<16x16xf32> to vector<16x16xbf16>
    %43 = arith.truncf %25 : vector<16x16xf32> to vector<16x16xbf16>
    %cst_21 = arith.constant dense<0.000000e+00> : vector<16x16xf32>
    %44 = tpu.matmul %42, %43, %cst_21 {dimension_numbers = #tpu.dot_dimension_numbers<[1], [0], [0], [1], [0, 0, 1, 1], [], []>} : vector<16x16xbf16>, vector<16x16xbf16>, vector<16x16xf32> -> vector<16x16xf32>
    %45 = vector.extract_strided_slice %22 {offsets = [0, 16], sizes = [16, 16], strides = [1, 1]} : vector<16x96xf32> to vector<16x16xf32>
    %46 = vector.extract_strided_slice %22 {offsets = [0, 48], sizes = [16, 16], strides = [1, 1]} : vector<16x96xf32> to vector<16x16xf32>
    %47 = vector.extract_strided_slice %22 {offsets = [0, 80], sizes = [16, 16], strides = [1, 1]} : vector<16x96xf32> to vector<16x16xf32>
    %48 = arith.truncf %45 : vector<16x16xf32> to vector<16x16xbf16>
    %49 = arith.truncf %46 : vector<16x16xf32> to vector<16x16xbf16>
    %cst_22 = arith.constant dense<0.000000e+00> : vector<16x16xf32>
    %50 = tpu.matmul %48, %49, %cst_22 {dimension_numbers = #tpu.dot_dimension_numbers<[1], [1], [0], [0], [0, 0, 1, 0], [], []>} : vector<16x16xbf16>, vector<16x16xbf16>, vector<16x16xf32> -> vector<16x16xf32>
    %cst_23 = arith.constant 2.500000e-01 : f32
    %51 = vector.broadcast %cst_23 : f32 to vector<16x16xf32>
    %52 = arith.mulf %50, %51 : vector<16x16xf32>
    %53 = arith.addf %52, %12 : vector<16x16xf32>
    %cst_24 = arith.constant dense<0xFF800000> : vector<16xf32>
    %54 = vector.multi_reduction <maximumf>, %53, %cst_24 [1] : vector<16x16xf32> to vector<16xf32>
    %55 = vector.shape_cast %54 : vector<16xf32> to vector<16x1xf32>
    %56 = vector.broadcast %55 : vector<16x1xf32> to vector<16x16xf32>
    %57 = arith.subf %53, %56 : vector<16x16xf32>
    %58 = math.exp %57 : vector<16x16xf32>
    %cst_25 = arith.constant dense<0.000000e+00> : vector<16xf32>
    %59 = vector.multi_reduction <add>, %58, %cst_25 [1] : vector<16x16xf32> to vector<16xf32>
    %60 = vector.shape_cast %59 : vector<16xf32> to vector<16x1xf32>
    %61 = tpu.reciprocal %60 {approx = true} : vector<16x1xf32> -> vector<16x1xf32>
    %62 = vector.broadcast %61 : vector<16x1xf32> to vector<16x16xf32>
    %63 = arith.mulf %58, %62 : vector<16x16xf32>
    %64 = arith.truncf %63 : vector<16x16xf32> to vector<16x16xbf16>
    %65 = arith.truncf %47 : vector<16x16xf32> to vector<16x16xbf16>
    %cst_26 = arith.constant dense<0.000000e+00> : vector<16x16xf32>
    %66 = tpu.matmul %64, %65, %cst_26 {dimension_numbers = #tpu.dot_dimension_numbers<[1], [0], [0], [1], [0, 0, 1, 1], [], []>} : vector<16x16xbf16>, vector<16x16xbf16>, vector<16x16xf32> -> vector<16x16xf32>
    %67 = tpu.concatenate %44, %66 in 1 : vector<16x16xf32>, vector<16x16xf32> -> vector<16x32xf32>
    %68 = arith.truncf %67 : vector<16x32xf32> to vector<16x32xbf16>
    %69 = vector.extract_strided_slice %17 {offsets = [0, 0], sizes = [32, 32], strides = [1, 1]} : vector<192x32xbf16> to vector<32x32xbf16>
    %cst_27 = arith.constant dense<0.000000e+00> : vector<16x32xf32>
    %70 = tpu.matmul %68, %69, %cst_27 {dimension_numbers = #tpu.dot_dimension_numbers<[1], [0], [0], [1], [0, 0, 1, 1], [], []>} : vector<16x32xbf16>, vector<32x32xbf16>, vector<16x32xf32> -> vector<16x32xf32>
    %c24 = arith.constant 24 : index
    %c0_28 = arith.constant 0 : index
    %71 = vector.load %arg5[%c24, %c0_28] : memref<720x128xf32, #tpu.memory_space<vmem>>, vector<16x32xf32>
    %72 = arith.addf %70, %71 : vector<16x32xf32>
    %73 = arith.addf %10, %72 : vector<16x32xf32>
    %c48 = arith.constant 48 : index
    %c0_29 = arith.constant 0 : index
    %74 = vector.load %arg5[%c48, %c0_29] : memref<720x128xf32, #tpu.memory_space<vmem>>, vector<16x32xf32>
    %c72 = arith.constant 72 : index
    %c0_30 = arith.constant 0 : index
    %75 = vector.load %arg5[%c72, %c0_30] : memref<720x128xf32, #tpu.memory_space<vmem>>, vector<16x32xf32>
    %cst_31 = arith.constant dense<0.000000e+00> : vector<16xf32>
    %76 = vector.multi_reduction <add>, %73, %cst_31 [1] : vector<16x32xf32> to vector<16xf32>
    %77 = vector.shape_cast %76 : vector<16xf32> to vector<16x1xf32>
    %cst_32 = arith.constant 3.200000e+01 : f32
    %78 = vector.broadcast %cst_32 : f32 to vector<16x1xf32>
    %79 = arith.divf %77, %78 : vector<16x1xf32>
    %80 = vector.broadcast %79 : vector<16x1xf32> to vector<16x32xf32>
    %81 = arith.subf %73, %80 : vector<16x32xf32>
    %82 = arith.mulf %81, %81 : vector<16x32xf32>
    %cst_33 = arith.constant dense<0.000000e+00> : vector<16xf32>
    %83 = vector.multi_reduction <add>, %82, %cst_33 [1] : vector<16x32xf32> to vector<16xf32>
    %84 = vector.shape_cast %83 : vector<16xf32> to vector<16x1xf32>
    %cst_34 = arith.constant 3.200000e+01 : f32
    %85 = vector.broadcast %cst_34 : f32 to vector<16x1xf32>
    %86 = arith.divf %84, %85 : vector<16x1xf32>
    %cst_35 = arith.constant 9.99999974E-6 : f32
    %87 = vector.broadcast %cst_35 : f32 to vector<16x1xf32>
    %88 = arith.addf %86, %87 : vector<16x1xf32>
    %89 = math.rsqrt %88 : vector<16x1xf32>
    %90 = vector.broadcast %89 : vector<16x1xf32> to vector<16x32xf32>
    %91 = arith.mulf %81, %90 : vector<16x32xf32>
    %92 = arith.mulf %91, %74 : vector<16x32xf32>
    %93 = arith.addf %92, %75 : vector<16x32xf32>
    %94 = arith.truncf %93 : vector<16x32xf32> to vector<16x32xbf16>
    %95 = vector.extract_strided_slice %15 {offsets = [32, 0], sizes = [32, 32], strides = [1, 1]} : vector<96x128xbf16> to vector<32x32xbf16>
    %cst_36 = arith.constant dense<0.000000e+00> : vector<16x32xf32>
    %96 = tpu.matmul %94, %95, %cst_36 {dimension_numbers = #tpu.dot_dimension_numbers<[1], [0], [0], [1], [0, 0, 1, 1], [], []>} : vector<16x32xbf16>, vector<32x32xbf16>, vector<16x32xf32> -> vector<16x32xf32>
    %c96 = arith.constant 96 : index
    %c0_37 = arith.constant 0 : index
    %97 = vector.load %arg5[%c96, %c0_37] : memref<720x128xf32, #tpu.memory_space<vmem>>, vector<16x32xf32>
    %98 = arith.addf %96, %97 : vector<16x32xf32>
    %99 = vector.extract_strided_slice %15 {offsets = [32, 32], sizes = [32, 64], strides = [1, 1]} : vector<96x128xbf16> to vector<32x64xbf16>
    %cst_38 = arith.constant dense<0.000000e+00> : vector<24x64xf32>
    %100 = tpu.matmul %11, %99, %cst_38 {dimension_numbers = #tpu.dot_dimension_numbers<[1], [0], [0], [1], [0, 0, 1, 1], [], []>} : vector<24x32xbf16>, vector<32x64xbf16>, vector<24x64xf32> -> vector<24x64xf32>
    %c120 = arith.constant 120 : index
    %c0_39 = arith.constant 0 : index
    %101 = vector.load %arg5[%c120, %c0_39] : memref<720x128xf32, #tpu.memory_space<vmem>>, vector<24x64xf32>
    %102 = arith.addf %100, %101 : vector<24x64xf32>
    %103 = vector.extract_strided_slice %98 {offsets = [0, 0], sizes = [16, 16], strides = [1, 1]} : vector<16x32xf32> to vector<16x16xf32>
    %104 = vector.extract_strided_slice %102 {offsets = [0, 0], sizes = [24, 16], strides = [1, 1]} : vector<24x64xf32> to vector<24x16xf32>
    %105 = vector.extract_strided_slice %102 {offsets = [0, 32], sizes = [24, 16], strides = [1, 1]} : vector<24x64xf32> to vector<24x16xf32>
    %106 = arith.truncf %103 : vector<16x16xf32> to vector<16x16xbf16>
    %107 = arith.truncf %104 : vector<24x16xf32> to vector<24x16xbf16>
    %cst_40 = arith.constant dense<0.000000e+00> : vector<16x24xf32>
    %108 = tpu.matmul %106, %107, %cst_40 {dimension_numbers = #tpu.dot_dimension_numbers<[1], [1], [0], [0], [0, 0, 1, 0], [], []>} : vector<16x16xbf16>, vector<24x16xbf16>, vector<16x24xf32> -> vector<16x24xf32>
    %cst_41 = arith.constant 2.500000e-01 : f32
    %109 = vector.broadcast %cst_41 : f32 to vector<16x24xf32>
    %110 = arith.mulf %108, %109 : vector<16x24xf32>
    %111 = arith.addf %110, %13 : vector<16x24xf32>
    %cst_42 = arith.constant dense<0xFF800000> : vector<16xf32>
    %112 = vector.multi_reduction <maximumf>, %111, %cst_42 [1] : vector<16x24xf32> to vector<16xf32>
    %113 = vector.shape_cast %112 : vector<16xf32> to vector<16x1xf32>
    %114 = vector.broadcast %113 : vector<16x1xf32> to vector<16x24xf32>
    %115 = arith.subf %111, %114 : vector<16x24xf32>
    %116 = math.exp %115 : vector<16x24xf32>
    %cst_43 = arith.constant dense<0.000000e+00> : vector<16xf32>
    %117 = vector.multi_reduction <add>, %116, %cst_43 [1] : vector<16x24xf32> to vector<16xf32>
    %118 = vector.shape_cast %117 : vector<16xf32> to vector<16x1xf32>
    %119 = tpu.reciprocal %118 {approx = true} : vector<16x1xf32> -> vector<16x1xf32>
    %120 = vector.broadcast %119 : vector<16x1xf32> to vector<16x24xf32>
    %121 = arith.mulf %116, %120 : vector<16x24xf32>
    %122 = arith.truncf %121 : vector<16x24xf32> to vector<16x24xbf16>
    %123 = arith.truncf %105 : vector<24x16xf32> to vector<24x16xbf16>
    %cst_44 = arith.constant dense<0.000000e+00> : vector<16x16xf32>
    %124 = tpu.matmul %122, %123, %cst_44 {dimension_numbers = #tpu.dot_dimension_numbers<[1], [0], [0], [1], [0, 0, 1, 1], [], []>} : vector<16x24xbf16>, vector<24x16xbf16>, vector<16x16xf32> -> vector<16x16xf32>
    %125 = vector.extract_strided_slice %98 {offsets = [0, 16], sizes = [16, 16], strides = [1, 1]} : vector<16x32xf32> to vector<16x16xf32>
    %126 = vector.extract_strided_slice %102 {offsets = [0, 16], sizes = [24, 16], strides = [1, 1]} : vector<24x64xf32> to vector<24x16xf32>
    %127 = vector.extract_strided_slice %102 {offsets = [0, 48], sizes = [24, 16], strides = [1, 1]} : vector<24x64xf32> to vector<24x16xf32>
    %128 = arith.truncf %125 : vector<16x16xf32> to vector<16x16xbf16>
    %129 = arith.truncf %126 : vector<24x16xf32> to vector<24x16xbf16>
    %cst_45 = arith.constant dense<0.000000e+00> : vector<16x24xf32>
    %130 = tpu.matmul %128, %129, %cst_45 {dimension_numbers = #tpu.dot_dimension_numbers<[1], [1], [0], [0], [0, 0, 1, 0], [], []>} : vector<16x16xbf16>, vector<24x16xbf16>, vector<16x24xf32> -> vector<16x24xf32>
    %cst_46 = arith.constant 2.500000e-01 : f32
    %131 = vector.broadcast %cst_46 : f32 to vector<16x24xf32>
    %132 = arith.mulf %130, %131 : vector<16x24xf32>
    %133 = arith.addf %132, %13 : vector<16x24xf32>
    %cst_47 = arith.constant dense<0xFF800000> : vector<16xf32>
    %134 = vector.multi_reduction <maximumf>, %133, %cst_47 [1] : vector<16x24xf32> to vector<16xf32>
    %135 = vector.shape_cast %134 : vector<16xf32> to vector<16x1xf32>
    %136 = vector.broadcast %135 : vector<16x1xf32> to vector<16x24xf32>
    %137 = arith.subf %133, %136 : vector<16x24xf32>
    %138 = math.exp %137 : vector<16x24xf32>
    %cst_48 = arith.constant dense<0.000000e+00> : vector<16xf32>
    %139 = vector.multi_reduction <add>, %138, %cst_48 [1] : vector<16x24xf32> to vector<16xf32>
    %140 = vector.shape_cast %139 : vector<16xf32> to vector<16x1xf32>
    %141 = tpu.reciprocal %140 {approx = true} : vector<16x1xf32> -> vector<16x1xf32>
    %142 = vector.broadcast %141 : vector<16x1xf32> to vector<16x24xf32>
    %143 = arith.mulf %138, %142 : vector<16x24xf32>
    %144 = arith.truncf %143 : vector<16x24xf32> to vector<16x24xbf16>
    %145 = arith.truncf %127 : vector<24x16xf32> to vector<24x16xbf16>
    %cst_49 = arith.constant dense<0.000000e+00> : vector<16x16xf32>
    %146 = tpu.matmul %144, %145, %cst_49 {dimension_numbers = #tpu.dot_dimension_numbers<[1], [0], [0], [1], [0, 0, 1, 1], [], []>} : vector<16x24xbf16>, vector<24x16xbf16>, vector<16x16xf32> -> vector<16x16xf32>
    %147 = tpu.concatenate %124, %146 in 1 : vector<16x16xf32>, vector<16x16xf32> -> vector<16x32xf32>
    %148 = arith.truncf %147 : vector<16x32xf32> to vector<16x32xbf16>
    %149 = vector.extract_strided_slice %17 {offsets = [32, 0], sizes = [32, 32], strides = [1, 1]} : vector<192x32xbf16> to vector<32x32xbf16>
    %cst_50 = arith.constant dense<0.000000e+00> : vector<16x32xf32>
    %150 = tpu.matmul %148, %149, %cst_50 {dimension_numbers = #tpu.dot_dimension_numbers<[1], [0], [0], [1], [0, 0, 1, 1], [], []>} : vector<16x32xbf16>, vector<32x32xbf16>, vector<16x32xf32> -> vector<16x32xf32>
    %c144 = arith.constant 144 : index
    %c0_51 = arith.constant 0 : index
    %151 = vector.load %arg5[%c144, %c0_51] : memref<720x128xf32, #tpu.memory_space<vmem>>, vector<16x32xf32>
    %152 = arith.addf %150, %151 : vector<16x32xf32>
    %153 = arith.addf %93, %152 : vector<16x32xf32>
    %c168 = arith.constant 168 : index
    %c0_52 = arith.constant 0 : index
    %154 = vector.load %arg5[%c168, %c0_52] : memref<720x128xf32, #tpu.memory_space<vmem>>, vector<16x32xf32>
    %c192 = arith.constant 192 : index
    %c0_53 = arith.constant 0 : index
    %155 = vector.load %arg5[%c192, %c0_53] : memref<720x128xf32, #tpu.memory_space<vmem>>, vector<16x32xf32>
    %cst_54 = arith.constant dense<0.000000e+00> : vector<16xf32>
    %156 = vector.multi_reduction <add>, %153, %cst_54 [1] : vector<16x32xf32> to vector<16xf32>
    %157 = vector.shape_cast %156 : vector<16xf32> to vector<16x1xf32>
    %cst_55 = arith.constant 3.200000e+01 : f32
    %158 = vector.broadcast %cst_55 : f32 to vector<16x1xf32>
    %159 = arith.divf %157, %158 : vector<16x1xf32>
    %160 = vector.broadcast %159 : vector<16x1xf32> to vector<16x32xf32>
    %161 = arith.subf %153, %160 : vector<16x32xf32>
    %162 = arith.mulf %161, %161 : vector<16x32xf32>
    %cst_56 = arith.constant dense<0.000000e+00> : vector<16xf32>
    %163 = vector.multi_reduction <add>, %162, %cst_56 [1] : vector<16x32xf32> to vector<16xf32>
    %164 = vector.shape_cast %163 : vector<16xf32> to vector<16x1xf32>
    %cst_57 = arith.constant 3.200000e+01 : f32
    %165 = vector.broadcast %cst_57 : f32 to vector<16x1xf32>
    %166 = arith.divf %164, %165 : vector<16x1xf32>
    %cst_58 = arith.constant 9.99999974E-6 : f32
    %167 = vector.broadcast %cst_58 : f32 to vector<16x1xf32>
    %168 = arith.addf %166, %167 : vector<16x1xf32>
    %169 = math.rsqrt %168 : vector<16x1xf32>
    %170 = vector.broadcast %169 : vector<16x1xf32> to vector<16x32xf32>
    %171 = arith.mulf %161, %170 : vector<16x32xf32>
    %172 = arith.mulf %171, %154 : vector<16x32xf32>
    %173 = arith.addf %172, %155 : vector<16x32xf32>
    %174 = arith.truncf %173 : vector<16x32xf32> to vector<16x32xbf16>
    %175 = vector.extract_strided_slice %15 {offsets = [64, 0], sizes = [32, 128], strides = [1, 1]} : vector<96x128xbf16> to vector<32x128xbf16>
    %cst_59 = arith.constant dense<0.000000e+00> : vector<16x128xf32>
    %176 = tpu.matmul %174, %175, %cst_59 {dimension_numbers = #tpu.dot_dimension_numbers<[1], [0], [0], [1], [0, 0, 1, 1], [], []>} : vector<16x32xbf16>, vector<32x128xbf16>, vector<16x128xf32> -> vector<16x128xf32>
    %c216 = arith.constant 216 : index
    %c0_60 = arith.constant 0 : index
    %177 = vector.load %arg5[%c216, %c0_60] : memref<720x128xf32, #tpu.memory_space<vmem>>, vector<16x128xf32>
    %178 = arith.addf %176, %177 : vector<16x128xf32>
    %cst_61 = arith.constant 0.000000e+00 : f32
    %179 = vector.broadcast %cst_61 : f32 to vector<16x128xf32>
    %180 = arith.maximumf %178, %179 : vector<16x128xf32>
    %181 = arith.truncf %180 : vector<16x128xf32> to vector<16x128xbf16>
    %182 = vector.extract_strided_slice %17 {offsets = [64, 0], sizes = [128, 32], strides = [1, 1]} : vector<192x32xbf16> to vector<128x32xbf16>
    %cst_62 = arith.constant dense<0.000000e+00> : vector<16x32xf32>
    %183 = tpu.matmul %181, %182, %cst_62 {dimension_numbers = #tpu.dot_dimension_numbers<[1], [0], [0], [1], [0, 0, 1, 1], [], []>} : vector<16x128xbf16>, vector<128x32xbf16>, vector<16x32xf32> -> vector<16x32xf32>
    %c240 = arith.constant 240 : index
    %c0_63 = arith.constant 0 : index
    %184 = vector.load %arg5[%c240, %c0_63] : memref<720x128xf32, #tpu.memory_space<vmem>>, vector<16x32xf32>
    %185 = arith.addf %183, %184 : vector<16x32xf32>
    %186 = arith.addf %173, %185 : vector<16x32xf32>
    %c264 = arith.constant 264 : index
    %c0_64 = arith.constant 0 : index
    %187 = vector.load %arg5[%c264, %c0_64] : memref<720x128xf32, #tpu.memory_space<vmem>>, vector<16x32xf32>
    %c288 = arith.constant 288 : index
    %c0_65 = arith.constant 0 : index
    %188 = vector.load %arg5[%c288, %c0_65] : memref<720x128xf32, #tpu.memory_space<vmem>>, vector<16x32xf32>
    %cst_66 = arith.constant dense<0.000000e+00> : vector<16xf32>
    %189 = vector.multi_reduction <add>, %186, %cst_66 [1] : vector<16x32xf32> to vector<16xf32>
    %190 = vector.shape_cast %189 : vector<16xf32> to vector<16x1xf32>
    %cst_67 = arith.constant 3.200000e+01 : f32
    %191 = vector.broadcast %cst_67 : f32 to vector<16x1xf32>
    %192 = arith.divf %190, %191 : vector<16x1xf32>
    %193 = vector.broadcast %192 : vector<16x1xf32> to vector<16x32xf32>
    %194 = arith.subf %186, %193 : vector<16x32xf32>
    %195 = arith.mulf %194, %194 : vector<16x32xf32>
    %cst_68 = arith.constant dense<0.000000e+00> : vector<16xf32>
    %196 = vector.multi_reduction <add>, %195, %cst_68 [1] : vector<16x32xf32> to vector<16xf32>
    %197 = vector.shape_cast %196 : vector<16xf32> to vector<16x1xf32>
    %cst_69 = arith.constant 3.200000e+01 : f32
    %198 = vector.broadcast %cst_69 : f32 to vector<16x1xf32>
    %199 = arith.divf %197, %198 : vector<16x1xf32>
    %cst_70 = arith.constant 9.99999974E-6 : f32
    %200 = vector.broadcast %cst_70 : f32 to vector<16x1xf32>
    %201 = arith.addf %199, %200 : vector<16x1xf32>
    %202 = math.rsqrt %201 : vector<16x1xf32>
    %203 = vector.broadcast %202 : vector<16x1xf32> to vector<16x32xf32>
    %204 = arith.mulf %194, %203 : vector<16x32xf32>
    %205 = arith.mulf %204, %187 : vector<16x32xf32>
    %206 = arith.addf %205, %188 : vector<16x32xf32>
    %c1 = arith.constant 1 : index
    %c0_71 = arith.constant 0 : index
    %c0_72 = arith.constant 0 : index
    %207 = vector.load %arg3[%c1, %c0_71, %c0_72] : memref<2x96x128xbf16, #tpu.memory_space<vmem>>, vector<1x96x128xbf16>
    %208 = vector.shape_cast %207 : vector<1x96x128xbf16> to vector<96x128xbf16>
    %c1_73 = arith.constant 1 : index
    %c0_74 = arith.constant 0 : index
    %c0_75 = arith.constant 0 : index
    %209 = vector.load %arg4[%c1_73, %c0_74, %c0_75] : memref<2x192x32xbf16, #tpu.memory_space<vmem>>, vector<1x192x32xbf16>
    %210 = vector.shape_cast %209 : vector<1x192x32xbf16> to vector<192x32xbf16>
    %211 = arith.truncf %206 : vector<16x32xf32> to vector<16x32xbf16>
    %212 = vector.extract_strided_slice %208 {offsets = [0, 0], sizes = [32, 96], strides = [1, 1]} : vector<96x128xbf16> to vector<32x96xbf16>
    %cst_76 = arith.constant dense<0.000000e+00> : vector<16x96xf32>
    %213 = tpu.matmul %211, %212, %cst_76 {dimension_numbers = #tpu.dot_dimension_numbers<[1], [0], [0], [1], [0, 0, 1, 1], [], []>} : vector<16x32xbf16>, vector<32x96xbf16>, vector<16x96xf32> -> vector<16x96xf32>
    %c312 = arith.constant 312 : index
    %c0_77 = arith.constant 0 : index
    %214 = vector.load %arg5[%c312, %c0_77] : memref<720x128xf32, #tpu.memory_space<vmem>>, vector<16x96xf32>
    %215 = arith.addf %213, %214 : vector<16x96xf32>
    %216 = vector.extract_strided_slice %215 {offsets = [0, 0], sizes = [16, 16], strides = [1, 1]} : vector<16x96xf32> to vector<16x16xf32>
    %217 = vector.extract_strided_slice %215 {offsets = [0, 32], sizes = [16, 16], strides = [1, 1]} : vector<16x96xf32> to vector<16x16xf32>
    %218 = vector.extract_strided_slice %215 {offsets = [0, 64], sizes = [16, 16], strides = [1, 1]} : vector<16x96xf32> to vector<16x16xf32>
    %219 = arith.truncf %216 : vector<16x16xf32> to vector<16x16xbf16>
    %220 = arith.truncf %217 : vector<16x16xf32> to vector<16x16xbf16>
    %cst_78 = arith.constant dense<0.000000e+00> : vector<16x16xf32>
    %221 = tpu.matmul %219, %220, %cst_78 {dimension_numbers = #tpu.dot_dimension_numbers<[1], [1], [0], [0], [0, 0, 1, 0], [], []>} : vector<16x16xbf16>, vector<16x16xbf16>, vector<16x16xf32> -> vector<16x16xf32>
    %cst_79 = arith.constant 2.500000e-01 : f32
    %222 = vector.broadcast %cst_79 : f32 to vector<16x16xf32>
    %223 = arith.mulf %221, %222 : vector<16x16xf32>
    %224 = arith.addf %223, %12 : vector<16x16xf32>
    %cst_80 = arith.constant dense<0xFF800000> : vector<16xf32>
    %225 = vector.multi_reduction <maximumf>, %224, %cst_80 [1] : vector<16x16xf32> to vector<16xf32>
    %226 = vector.shape_cast %225 : vector<16xf32> to vector<16x1xf32>
    %227 = vector.broadcast %226 : vector<16x1xf32> to vector<16x16xf32>
    %228 = arith.subf %224, %227 : vector<16x16xf32>
    %229 = math.exp %228 : vector<16x16xf32>
    %cst_81 = arith.constant dense<0.000000e+00> : vector<16xf32>
    %230 = vector.multi_reduction <add>, %229, %cst_81 [1] : vector<16x16xf32> to vector<16xf32>
    %231 = vector.shape_cast %230 : vector<16xf32> to vector<16x1xf32>
    %232 = tpu.reciprocal %231 {approx = true} : vector<16x1xf32> -> vector<16x1xf32>
    %233 = vector.broadcast %232 : vector<16x1xf32> to vector<16x16xf32>
    %234 = arith.mulf %229, %233 : vector<16x16xf32>
    %235 = arith.truncf %234 : vector<16x16xf32> to vector<16x16xbf16>
    %236 = arith.truncf %218 : vector<16x16xf32> to vector<16x16xbf16>
    %cst_82 = arith.constant dense<0.000000e+00> : vector<16x16xf32>
    %237 = tpu.matmul %235, %236, %cst_82 {dimension_numbers = #tpu.dot_dimension_numbers<[1], [0], [0], [1], [0, 0, 1, 1], [], []>} : vector<16x16xbf16>, vector<16x16xbf16>, vector<16x16xf32> -> vector<16x16xf32>
    %238 = vector.extract_strided_slice %215 {offsets = [0, 16], sizes = [16, 16], strides = [1, 1]} : vector<16x96xf32> to vector<16x16xf32>
    %239 = vector.extract_strided_slice %215 {offsets = [0, 48], sizes = [16, 16], strides = [1, 1]} : vector<16x96xf32> to vector<16x16xf32>
    %240 = vector.extract_strided_slice %215 {offsets = [0, 80], sizes = [16, 16], strides = [1, 1]} : vector<16x96xf32> to vector<16x16xf32>
    %241 = arith.truncf %238 : vector<16x16xf32> to vector<16x16xbf16>
    %242 = arith.truncf %239 : vector<16x16xf32> to vector<16x16xbf16>
    %cst_83 = arith.constant dense<0.000000e+00> : vector<16x16xf32>
    %243 = tpu.matmul %241, %242, %cst_83 {dimension_numbers = #tpu.dot_dimension_numbers<[1], [1], [0], [0], [0, 0, 1, 0], [], []>} : vector<16x16xbf16>, vector<16x16xbf16>, vector<16x16xf32> -> vector<16x16xf32>
    %cst_84 = arith.constant 2.500000e-01 : f32
    %244 = vector.broadcast %cst_84 : f32 to vector<16x16xf32>
    %245 = arith.mulf %243, %244 : vector<16x16xf32>
    %246 = arith.addf %245, %12 : vector<16x16xf32>
    %cst_85 = arith.constant dense<0xFF800000> : vector<16xf32>
    %247 = vector.multi_reduction <maximumf>, %246, %cst_85 [1] : vector<16x16xf32> to vector<16xf32>
    %248 = vector.shape_cast %247 : vector<16xf32> to vector<16x1xf32>
    %249 = vector.broadcast %248 : vector<16x1xf32> to vector<16x16xf32>
    %250 = arith.subf %246, %249 : vector<16x16xf32>
    %251 = math.exp %250 : vector<16x16xf32>
    %cst_86 = arith.constant dense<0.000000e+00> : vector<16xf32>
    %252 = vector.multi_reduction <add>, %251, %cst_86 [1] : vector<16x16xf32> to vector<16xf32>
    %253 = vector.shape_cast %252 : vector<16xf32> to vector<16x1xf32>
    %254 = tpu.reciprocal %253 {approx = true} : vector<16x1xf32> -> vector<16x1xf32>
    %255 = vector.broadcast %254 : vector<16x1xf32> to vector<16x16xf32>
    %256 = arith.mulf %251, %255 : vector<16x16xf32>
    %257 = arith.truncf %256 : vector<16x16xf32> to vector<16x16xbf16>
    %258 = arith.truncf %240 : vector<16x16xf32> to vector<16x16xbf16>
    %cst_87 = arith.constant dense<0.000000e+00> : vector<16x16xf32>
    %259 = tpu.matmul %257, %258, %cst_87 {dimension_numbers = #tpu.dot_dimension_numbers<[1], [0], [0], [1], [0, 0, 1, 1], [], []>} : vector<16x16xbf16>, vector<16x16xbf16>, vector<16x16xf32> -> vector<16x16xf32>
    %260 = tpu.concatenate %237, %259 in 1 : vector<16x16xf32>, vector<16x16xf32> -> vector<16x32xf32>
    %261 = arith.truncf %260 : vector<16x32xf32> to vector<16x32xbf16>
    %262 = vector.extract_strided_slice %210 {offsets = [0, 0], sizes = [32, 32], strides = [1, 1]} : vector<192x32xbf16> to vector<32x32xbf16>
    %cst_88 = arith.constant dense<0.000000e+00> : vector<16x32xf32>
    %263 = tpu.matmul %261, %262, %cst_88 {dimension_numbers = #tpu.dot_dimension_numbers<[1], [0], [0], [1], [0, 0, 1, 1], [], []>} : vector<16x32xbf16>, vector<32x32xbf16>, vector<16x32xf32> -> vector<16x32xf32>
    %c336 = arith.constant 336 : index
    %c0_89 = arith.constant 0 : index
    %264 = vector.load %arg5[%c336, %c0_89] : memref<720x128xf32, #tpu.memory_space<vmem>>, vector<16x32xf32>
    %265 = arith.addf %263, %264 : vector<16x32xf32>
    %266 = arith.addf %206, %265 : vector<16x32xf32>
    %c360 = arith.constant 360 : index
    %c0_90 = arith.constant 0 : index
    %267 = vector.load %arg5[%c360, %c0_90] : memref<720x128xf32, #tpu.memory_space<vmem>>, vector<16x32xf32>
    %c384 = arith.constant 384 : index
    %c0_91 = arith.constant 0 : index
    %268 = vector.load %arg5[%c384, %c0_91] : memref<720x128xf32, #tpu.memory_space<vmem>>, vector<16x32xf32>
    %cst_92 = arith.constant dense<0.000000e+00> : vector<16xf32>
    %269 = vector.multi_reduction <add>, %266, %cst_92 [1] : vector<16x32xf32> to vector<16xf32>
    %270 = vector.shape_cast %269 : vector<16xf32> to vector<16x1xf32>
    %cst_93 = arith.constant 3.200000e+01 : f32
    %271 = vector.broadcast %cst_93 : f32 to vector<16x1xf32>
    %272 = arith.divf %270, %271 : vector<16x1xf32>
    %273 = vector.broadcast %272 : vector<16x1xf32> to vector<16x32xf32>
    %274 = arith.subf %266, %273 : vector<16x32xf32>
    %275 = arith.mulf %274, %274 : vector<16x32xf32>
    %cst_94 = arith.constant dense<0.000000e+00> : vector<16xf32>
    %276 = vector.multi_reduction <add>, %275, %cst_94 [1] : vector<16x32xf32> to vector<16xf32>
    %277 = vector.shape_cast %276 : vector<16xf32> to vector<16x1xf32>
    %cst_95 = arith.constant 3.200000e+01 : f32
    %278 = vector.broadcast %cst_95 : f32 to vector<16x1xf32>
    %279 = arith.divf %277, %278 : vector<16x1xf32>
    %cst_96 = arith.constant 9.99999974E-6 : f32
    %280 = vector.broadcast %cst_96 : f32 to vector<16x1xf32>
    %281 = arith.addf %279, %280 : vector<16x1xf32>
    %282 = math.rsqrt %281 : vector<16x1xf32>
    %283 = vector.broadcast %282 : vector<16x1xf32> to vector<16x32xf32>
    %284 = arith.mulf %274, %283 : vector<16x32xf32>
    %285 = arith.mulf %284, %267 : vector<16x32xf32>
    %286 = arith.addf %285, %268 : vector<16x32xf32>
    %287 = arith.truncf %286 : vector<16x32xf32> to vector<16x32xbf16>
    %288 = vector.extract_strided_slice %208 {offsets = [32, 0], sizes = [32, 32], strides = [1, 1]} : vector<96x128xbf16> to vector<32x32xbf16>
    %cst_97 = arith.constant dense<0.000000e+00> : vector<16x32xf32>
    %289 = tpu.matmul %287, %288, %cst_97 {dimension_numbers = #tpu.dot_dimension_numbers<[1], [0], [0], [1], [0, 0, 1, 1], [], []>} : vector<16x32xbf16>, vector<32x32xbf16>, vector<16x32xf32> -> vector<16x32xf32>
    %c408 = arith.constant 408 : index
    %c0_98 = arith.constant 0 : index
    %290 = vector.load %arg5[%c408, %c0_98] : memref<720x128xf32, #tpu.memory_space<vmem>>, vector<16x32xf32>
    %291 = arith.addf %289, %290 : vector<16x32xf32>
    %292 = vector.extract_strided_slice %208 {offsets = [32, 32], sizes = [32, 64], strides = [1, 1]} : vector<96x128xbf16> to vector<32x64xbf16>
    %cst_99 = arith.constant dense<0.000000e+00> : vector<24x64xf32>
    %293 = tpu.matmul %11, %292, %cst_99 {dimension_numbers = #tpu.dot_dimension_numbers<[1], [0], [0], [1], [0, 0, 1, 1], [], []>} : vector<24x32xbf16>, vector<32x64xbf16>, vector<24x64xf32> -> vector<24x64xf32>
    %c432 = arith.constant 432 : index
    %c0_100 = arith.constant 0 : index
    %294 = vector.load %arg5[%c432, %c0_100] : memref<720x128xf32, #tpu.memory_space<vmem>>, vector<24x64xf32>
    %295 = arith.addf %293, %294 : vector<24x64xf32>
    %296 = vector.extract_strided_slice %291 {offsets = [0, 0], sizes = [16, 16], strides = [1, 1]} : vector<16x32xf32> to vector<16x16xf32>
    %297 = vector.extract_strided_slice %295 {offsets = [0, 0], sizes = [24, 16], strides = [1, 1]} : vector<24x64xf32> to vector<24x16xf32>
    %298 = vector.extract_strided_slice %295 {offsets = [0, 32], sizes = [24, 16], strides = [1, 1]} : vector<24x64xf32> to vector<24x16xf32>
    %299 = arith.truncf %296 : vector<16x16xf32> to vector<16x16xbf16>
    %300 = arith.truncf %297 : vector<24x16xf32> to vector<24x16xbf16>
    %cst_101 = arith.constant dense<0.000000e+00> : vector<16x24xf32>
    %301 = tpu.matmul %299, %300, %cst_101 {dimension_numbers = #tpu.dot_dimension_numbers<[1], [1], [0], [0], [0, 0, 1, 0], [], []>} : vector<16x16xbf16>, vector<24x16xbf16>, vector<16x24xf32> -> vector<16x24xf32>
    %cst_102 = arith.constant 2.500000e-01 : f32
    %302 = vector.broadcast %cst_102 : f32 to vector<16x24xf32>
    %303 = arith.mulf %301, %302 : vector<16x24xf32>
    %304 = arith.addf %303, %13 : vector<16x24xf32>
    %cst_103 = arith.constant dense<0xFF800000> : vector<16xf32>
    %305 = vector.multi_reduction <maximumf>, %304, %cst_103 [1] : vector<16x24xf32> to vector<16xf32>
    %306 = vector.shape_cast %305 : vector<16xf32> to vector<16x1xf32>
    %307 = vector.broadcast %306 : vector<16x1xf32> to vector<16x24xf32>
    %308 = arith.subf %304, %307 : vector<16x24xf32>
    %309 = math.exp %308 : vector<16x24xf32>
    %cst_104 = arith.constant dense<0.000000e+00> : vector<16xf32>
    %310 = vector.multi_reduction <add>, %309, %cst_104 [1] : vector<16x24xf32> to vector<16xf32>
    %311 = vector.shape_cast %310 : vector<16xf32> to vector<16x1xf32>
    %312 = tpu.reciprocal %311 {approx = true} : vector<16x1xf32> -> vector<16x1xf32>
    %313 = vector.broadcast %312 : vector<16x1xf32> to vector<16x24xf32>
    %314 = arith.mulf %309, %313 : vector<16x24xf32>
    %315 = arith.truncf %314 : vector<16x24xf32> to vector<16x24xbf16>
    %316 = arith.truncf %298 : vector<24x16xf32> to vector<24x16xbf16>
    %cst_105 = arith.constant dense<0.000000e+00> : vector<16x16xf32>
    %317 = tpu.matmul %315, %316, %cst_105 {dimension_numbers = #tpu.dot_dimension_numbers<[1], [0], [0], [1], [0, 0, 1, 1], [], []>} : vector<16x24xbf16>, vector<24x16xbf16>, vector<16x16xf32> -> vector<16x16xf32>
    %318 = vector.extract_strided_slice %291 {offsets = [0, 16], sizes = [16, 16], strides = [1, 1]} : vector<16x32xf32> to vector<16x16xf32>
    %319 = vector.extract_strided_slice %295 {offsets = [0, 16], sizes = [24, 16], strides = [1, 1]} : vector<24x64xf32> to vector<24x16xf32>
    %320 = vector.extract_strided_slice %295 {offsets = [0, 48], sizes = [24, 16], strides = [1, 1]} : vector<24x64xf32> to vector<24x16xf32>
    %321 = arith.truncf %318 : vector<16x16xf32> to vector<16x16xbf16>
    %322 = arith.truncf %319 : vector<24x16xf32> to vector<24x16xbf16>
    %cst_106 = arith.constant dense<0.000000e+00> : vector<16x24xf32>
    %323 = tpu.matmul %321, %322, %cst_106 {dimension_numbers = #tpu.dot_dimension_numbers<[1], [1], [0], [0], [0, 0, 1, 0], [], []>} : vector<16x16xbf16>, vector<24x16xbf16>, vector<16x24xf32> -> vector<16x24xf32>
    %cst_107 = arith.constant 2.500000e-01 : f32
    %324 = vector.broadcast %cst_107 : f32 to vector<16x24xf32>
    %325 = arith.mulf %323, %324 : vector<16x24xf32>
    %326 = arith.addf %325, %13 : vector<16x24xf32>
    %cst_108 = arith.constant dense<0xFF800000> : vector<16xf32>
    %327 = vector.multi_reduction <maximumf>, %326, %cst_108 [1] : vector<16x24xf32> to vector<16xf32>
    %328 = vector.shape_cast %327 : vector<16xf32> to vector<16x1xf32>
    %329 = vector.broadcast %328 : vector<16x1xf32> to vector<16x24xf32>
    %330 = arith.subf %326, %329 : vector<16x24xf32>
    %331 = math.exp %330 : vector<16x24xf32>
    %cst_109 = arith.constant dense<0.000000e+00> : vector<16xf32>
    %332 = vector.multi_reduction <add>, %331, %cst_109 [1] : vector<16x24xf32> to vector<16xf32>
    %333 = vector.shape_cast %332 : vector<16xf32> to vector<16x1xf32>
    %334 = tpu.reciprocal %333 {approx = true} : vector<16x1xf32> -> vector<16x1xf32>
    %335 = vector.broadcast %334 : vector<16x1xf32> to vector<16x24xf32>
    %336 = arith.mulf %331, %335 : vector<16x24xf32>
    %337 = arith.truncf %336 : vector<16x24xf32> to vector<16x24xbf16>
    %338 = arith.truncf %320 : vector<24x16xf32> to vector<24x16xbf16>
    %cst_110 = arith.constant dense<0.000000e+00> : vector<16x16xf32>
    %339 = tpu.matmul %337, %338, %cst_110 {dimension_numbers = #tpu.dot_dimension_numbers<[1], [0], [0], [1], [0, 0, 1, 1], [], []>} : vector<16x24xbf16>, vector<24x16xbf16>, vector<16x16xf32> -> vector<16x16xf32>
    %340 = tpu.concatenate %317, %339 in 1 : vector<16x16xf32>, vector<16x16xf32> -> vector<16x32xf32>
    %341 = arith.truncf %340 : vector<16x32xf32> to vector<16x32xbf16>
    %342 = vector.extract_strided_slice %210 {offsets = [32, 0], sizes = [32, 32], strides = [1, 1]} : vector<192x32xbf16> to vector<32x32xbf16>
    %cst_111 = arith.constant dense<0.000000e+00> : vector<16x32xf32>
    %343 = tpu.matmul %341, %342, %cst_111 {dimension_numbers = #tpu.dot_dimension_numbers<[1], [0], [0], [1], [0, 0, 1, 1], [], []>} : vector<16x32xbf16>, vector<32x32xbf16>, vector<16x32xf32> -> vector<16x32xf32>
    %c456 = arith.constant 456 : index
    %c0_112 = arith.constant 0 : index
    %344 = vector.load %arg5[%c456, %c0_112] : memref<720x128xf32, #tpu.memory_space<vmem>>, vector<16x32xf32>
    %345 = arith.addf %343, %344 : vector<16x32xf32>
    %346 = arith.addf %286, %345 : vector<16x32xf32>
    %c480 = arith.constant 480 : index
    %c0_113 = arith.constant 0 : index
    %347 = vector.load %arg5[%c480, %c0_113] : memref<720x128xf32, #tpu.memory_space<vmem>>, vector<16x32xf32>
    %c504 = arith.constant 504 : index
    %c0_114 = arith.constant 0 : index
    %348 = vector.load %arg5[%c504, %c0_114] : memref<720x128xf32, #tpu.memory_space<vmem>>, vector<16x32xf32>
    %cst_115 = arith.constant dense<0.000000e+00> : vector<16xf32>
    %349 = vector.multi_reduction <add>, %346, %cst_115 [1] : vector<16x32xf32> to vector<16xf32>
    %350 = vector.shape_cast %349 : vector<16xf32> to vector<16x1xf32>
    %cst_116 = arith.constant 3.200000e+01 : f32
    %351 = vector.broadcast %cst_116 : f32 to vector<16x1xf32>
    %352 = arith.divf %350, %351 : vector<16x1xf32>
    %353 = vector.broadcast %352 : vector<16x1xf32> to vector<16x32xf32>
    %354 = arith.subf %346, %353 : vector<16x32xf32>
    %355 = arith.mulf %354, %354 : vector<16x32xf32>
    %cst_117 = arith.constant dense<0.000000e+00> : vector<16xf32>
    %356 = vector.multi_reduction <add>, %355, %cst_117 [1] : vector<16x32xf32> to vector<16xf32>
    %357 = vector.shape_cast %356 : vector<16xf32> to vector<16x1xf32>
    %cst_118 = arith.constant 3.200000e+01 : f32
    %358 = vector.broadcast %cst_118 : f32 to vector<16x1xf32>
    %359 = arith.divf %357, %358 : vector<16x1xf32>
    %cst_119 = arith.constant 9.99999974E-6 : f32
    %360 = vector.broadcast %cst_119 : f32 to vector<16x1xf32>
    %361 = arith.addf %359, %360 : vector<16x1xf32>
    %362 = math.rsqrt %361 : vector<16x1xf32>
    %363 = vector.broadcast %362 : vector<16x1xf32> to vector<16x32xf32>
    %364 = arith.mulf %354, %363 : vector<16x32xf32>
    %365 = arith.mulf %364, %347 : vector<16x32xf32>
    %366 = arith.addf %365, %348 : vector<16x32xf32>
    %367 = arith.truncf %366 : vector<16x32xf32> to vector<16x32xbf16>
    %368 = vector.extract_strided_slice %208 {offsets = [64, 0], sizes = [32, 128], strides = [1, 1]} : vector<96x128xbf16> to vector<32x128xbf16>
    %cst_120 = arith.constant dense<0.000000e+00> : vector<16x128xf32>
    %369 = tpu.matmul %367, %368, %cst_120 {dimension_numbers = #tpu.dot_dimension_numbers<[1], [0], [0], [1], [0, 0, 1, 1], [], []>} : vector<16x32xbf16>, vector<32x128xbf16>, vector<16x128xf32> -> vector<16x128xf32>
    %c528 = arith.constant 528 : index
    %c0_121 = arith.constant 0 : index
    %370 = vector.load %arg5[%c528, %c0_121] : memref<720x128xf32, #tpu.memory_space<vmem>>, vector<16x128xf32>
    %371 = arith.addf %369, %370 : vector<16x128xf32>
    %cst_122 = arith.constant 0.000000e+00 : f32
    %372 = vector.broadcast %cst_122 : f32 to vector<16x128xf32>
    %373 = arith.maximumf %371, %372 : vector<16x128xf32>
    %374 = arith.truncf %373 : vector<16x128xf32> to vector<16x128xbf16>
    %375 = vector.extract_strided_slice %210 {offsets = [64, 0], sizes = [128, 32], strides = [1, 1]} : vector<192x32xbf16> to vector<128x32xbf16>
    %cst_123 = arith.constant dense<0.000000e+00> : vector<16x32xf32>
    %376 = tpu.matmul %374, %375, %cst_123 {dimension_numbers = #tpu.dot_dimension_numbers<[1], [0], [0], [1], [0, 0, 1, 1], [], []>} : vector<16x128xbf16>, vector<128x32xbf16>, vector<16x32xf32> -> vector<16x32xf32>
    %c552 = arith.constant 552 : index
    %c0_124 = arith.constant 0 : index
    %377 = vector.load %arg5[%c552, %c0_124] : memref<720x128xf32, #tpu.memory_space<vmem>>, vector<16x32xf32>
    %378 = arith.addf %376, %377 : vector<16x32xf32>
    %379 = arith.addf %366, %378 : vector<16x32xf32>
    %c576 = arith.constant 576 : index
    %c0_125 = arith.constant 0 : index
    %380 = vector.load %arg5[%c576, %c0_125] : memref<720x128xf32, #tpu.memory_space<vmem>>, vector<16x32xf32>
    %c600 = arith.constant 600 : index
    %c0_126 = arith.constant 0 : index
    %381 = vector.load %arg5[%c600, %c0_126] : memref<720x128xf32, #tpu.memory_space<vmem>>, vector<16x32xf32>
    %cst_127 = arith.constant dense<0.000000e+00> : vector<16xf32>
    %382 = vector.multi_reduction <add>, %379, %cst_127 [1] : vector<16x32xf32> to vector<16xf32>
    %383 = vector.shape_cast %382 : vector<16xf32> to vector<16x1xf32>
    %cst_128 = arith.constant 3.200000e+01 : f32
    %384 = vector.broadcast %cst_128 : f32 to vector<16x1xf32>
    %385 = arith.divf %383, %384 : vector<16x1xf32>
    %386 = vector.broadcast %385 : vector<16x1xf32> to vector<16x32xf32>
    %387 = arith.subf %379, %386 : vector<16x32xf32>
    %388 = arith.mulf %387, %387 : vector<16x32xf32>
    %cst_129 = arith.constant dense<0.000000e+00> : vector<16xf32>
    %389 = vector.multi_reduction <add>, %388, %cst_129 [1] : vector<16x32xf32> to vector<16xf32>
    %390 = vector.shape_cast %389 : vector<16xf32> to vector<16x1xf32>
    %cst_130 = arith.constant 3.200000e+01 : f32
    %391 = vector.broadcast %cst_130 : f32 to vector<16x1xf32>
    %392 = arith.divf %390, %391 : vector<16x1xf32>
    %cst_131 = arith.constant 9.99999974E-6 : f32
    %393 = vector.broadcast %cst_131 : f32 to vector<16x1xf32>
    %394 = arith.addf %392, %393 : vector<16x1xf32>
    %395 = math.rsqrt %394 : vector<16x1xf32>
    %396 = vector.broadcast %395 : vector<16x1xf32> to vector<16x32xf32>
    %397 = arith.mulf %387, %396 : vector<16x32xf32>
    %398 = arith.mulf %397, %380 : vector<16x32xf32>
    %399 = arith.addf %398, %381 : vector<16x32xf32>
    %c16 = arith.constant 16 : index
    %c0_132 = arith.constant 0 : index
    %400 = vector.load %arg1[%c16, %c0_132] : memref<48x128xbf16, #tpu.memory_space<vmem>>, vector<32x128xbf16>
    %401 = arith.truncf %399 : vector<16x32xf32> to vector<16x32xbf16>
    %cst_133 = arith.constant dense<0.000000e+00> : vector<16x128xf32>
    %402 = tpu.matmul %401, %400, %cst_133 {dimension_numbers = #tpu.dot_dimension_numbers<[1], [0], [0], [1], [0, 0, 1, 1], [], []>} : vector<16x32xbf16>, vector<32x128xbf16>, vector<16x128xf32> -> vector<16x128xf32>
    %c648 = arith.constant 648 : index
    %c0_134 = arith.constant 0 : index
    %403 = vector.load %arg5[%c648, %c0_134] : memref<720x128xf32, #tpu.memory_space<vmem>>, vector<16x128xf32>
    %404 = arith.addf %402, %403 : vector<16x128xf32>
    %c0_135 = arith.constant 0 : index
    %c0_136 = arith.constant 0 : index
    %405 = vector.load %arg6[%c0_135, %c0_136] : memref<16x128xf32, #tpu.memory_space<vmem>>, vector<16x128xf32>
    tpu.vector_store %arg6[%c0_135, %c0_136], %404 {strides = array<i32>} : memref<16x128xf32, #tpu.memory_space<vmem>>, vector<16x128xf32>,
    return
  }
}

</mosaic_0001>

<bundles_post_ra>
// kernel: transformer_decoder_forward.1
= control target key start
LH: loop header
LB: loop body
LE: loop exit
PB: predicated region body
PF: predicated region fallthrough
CT: control target
= control target key end

     0   :  { %11 = vsyncpa [#allocation3], 0  ;;  %s3662_s0 = inlined_call_operand.vmem [shape: s32[16,1], index: 0, kind: input, shape index: {}]   ;;  %s3663_s1 = inlined_call_operand.vmem [shape: bf16[48,128], index: 1, kind: input, shape index: {}]   ;;  %s3664_s2 = inlined_call_operand.vmem [shape: bf16[24,32], index: 2, kind: input, shape index: {}]   ;;  %s3665_s3 = inlined_call_operand.vmem [shape: bf16[2,96,128], index: 3, kind: input, shape index: {}]   ;;  %s3666_s4 = inlined_call_operand.hbm [shape: bf16[2,192,32], index: 4, kind: input, shape index: {}]   ;;  %s3667_s5 = inlined_call_operand.hbm [shape: f32[720,128], index: 5, kind: input, shape index: {}]   ;;  %s3668_s6 = inlined_call_operand.vmem [shape: f32[16,128], index: 6, kind: output, shape index: {}]  }
   0x1   :  { %12 = vsyncpa [#allocation5], 0  ;;  %s3148_s21 = smov [#allocation2]   ;;  %s3100_s25 = scalar_lea.hbm %s3666_s4, 3072 }
   0x2   :  { %s26_s22 = sshll.u32 %s3148_s21, 4  ;;  %p3101_p0 = scmp.ne.s32.totalorder %s3666_s4, %s3100_s25  ;;  %s27_s22 = int_to_ptr.vmem [resolvable:$true] %s26_s22 }
   0x3   :  { %p3104_p1 = scmp.lt.u32.totalorder %s3100_s25, %s3666_s4 }
   0x5   :  { %p3106_p2 = pnand %p3104_p1, %p3101_p0 }
   0x7   :  { %3109 = shalt.err (!%p3106_p2)
}
   0x8   :  { %s3110_s30 = scalar_lea.vmem %s27_s22, 3072  ;;  %p3115_p4 = scmp.lt.s32.totalorder %s27_s22, %s27_s22 }
   0x9   :  { %p3111_p3 = scmp.ne.s32.totalorder %s27_s22, %s3110_s30  ;;  %p3116_p5 = scmp.lt.s32.totalorder %s3110_s30, %s3110_s30 }
   0xb   :  { %p3117_p6 = por %p3116_p5, %p3115_p4 }
   0xd   :  { %p3118_p7 = pnand %p3117_p6, %p3111_p3 }
   0xf   :  { %3121 = shalt.err (!%p3118_p7)
}
  0x10   :  { %s3149_s7 = smov 64   ;;  %s3150_s8 = smov 4  }
  0x11   :  { %32 = dma.hbm_to_vmem [thread:$0]  %s3666_s4, 3072, %s27_s22, [#allocation3], %s3149_s7, %s3149_s7, %s3150_s8  }
  0x12   :  { %s3151_s11 = smov [#allocation4]   ;;  %s3122_s15 = scalar_lea.hbm %s3667_s5, 11520 }
  0x13   :  { %s38_s12 = sshll.u32 %s3151_s11, 4  ;;  %p3123_p8 = scmp.ne.s32.totalorder %s3667_s5, %s3122_s15  ;;  %s39_s12 = int_to_ptr.vmem [resolvable:$true] %s38_s12 }
  0x14   :  { %p3126_p9 = scmp.lt.u32.totalorder %s3122_s15, %s3667_s5 }
  0x16   :  { %p3128_p10 = pnand %p3126_p9, %p3123_p8 }
  0x18   :  { %3131 = shalt.err (!%p3128_p10)
}
  0x19   :  { %s3132_s20 = scalar_lea.vmem %s39_s12, 11520  ;;  %p3137_p12 = scmp.lt.s32.totalorder %s39_s12, %s39_s12 }
  0x1a   :  { %p3133_p11 = scmp.ne.s32.totalorder %s39_s12, %s3132_s20  ;;  %p3138_p13 = scmp.lt.s32.totalorder %s3132_s20, %s3132_s20 }
  0x1c   :  { %p3139_p0 = por %p3138_p13, %p3137_p12 }
  0x1e   :  { %p3140_p1 = pnand %p3139_p0, %p3133_p11 }
  0x20   :  { %3143 = shalt.err (!%p3140_p1)
}
  0x21   :  { %s3152_s4 = smov 128   ;;  %s3153_s21 = smov 8  }
  0x22   :  { %44 = dma.hbm_to_vmem [thread:$0]  %s3667_s5, 11520, %s39_s12, [#allocation5], %s3152_s4, %s3152_s4, %s3153_s21  }
  0x23   :  { %3144 = dma.done.wait [#allocation3], 3072  }
  0x24   :  { %3145 = vsyncadd [#allocation3], 4294964224 }
  0x25   :  { %3146 = dma.done.wait [#allocation5], 11520  }
  0x26   :  { %3147 = vsyncadd [#allocation5], 4294955776  ;;  %v3154_v0 = vmov 0   ;;  %v3155_v1 = vmov 0.0   ;;  %v52_v2 = vld [vmem:[%s3662_s0] sm:$0xff]  ;;  %v53_v3 = vld [vmem:[%s3662_s0 + $0x8] sm:$0xff]  ;;  %v54_v5 = vlaneseq }
  0x27   :  { %2946 = vset.pattern.permute.xlu0 %v3154_v0  ;;  %2670 = vmatprep.subr.bf16.mxu0 %v3155_v1  ;;  %v2967_v4 = vld [vmem:[%s3663_s1] sm:$0xff]   ;;  %vm3156_vm0 = vmmov 0   ;;  %vm79_vm3 = vcmask 130048   ;;  %v2969_v13 = vld [vmem:[%s3665_s3 + $0x8] sm:$0xff]   ;;  %v71_v14 = vld [vmem:[#allocation4 + $0x270] sm:$0xff]  ;;  %vm182_vm4 = vcmask 261120  }
  0x28   :  { %2690 = vmatprep.subr.bf16.mxu1 %v3155_v1  ;;  %57 = vperm.xlu0 %2946, %v52_v2   ;;  %v55_v6 = vand.u32 127, %v54_v5  ;;  %v2968_v12 = vld [vmem:[%s3665_s3] sm:$0xff]   ;;  %v72_v16 = vld [vmem:[#allocation4 + $0x278] sm:$0xff]  ;;  %v169_v25 = vld [vmem:[#allocation4 + $0x8] sm:$0xff]  ;;  %s3157_s9 = smov 112   ;;  %s3158_s10 = smov 96  }
  0x29   :  { %2671 = vmatpush3.bf16.msra.mxu0 %v2967_v4  ;;  %2672 = vmatprep.mubr.msk.bf16.mxu0 %vm3156_vm0, %v3155_v1  ;;  %v168_v23 = vld [vmem:[#allocation4] sm:$0xff]  ;;  %s3159_s11 = smov 80   ;;  %v3280_v42 = vld [vmem:[#allocation4 + $0x2a8] sm:$0xff]  ;;  %s3160_s12 = smov 48   ;;  %vm770_vm5 = vcmask 195584   ;;  %vm804_vm6 = vcmask 1043456  }
  0x2a   :  { %2676 = vmatprep.subr.bf16.mxu0 %v3155_v1  ;;  %2692 = vmatprep.mubr.msk.bf16.mxu1 %vm3156_vm0, %v3155_v1  ;;  %v127_v38 = vld [vmem:[#allocation4 + $0x2a0] sm:$0xff]  ;;  %s3161_s13 = smov 16  }
  0x2c   :  { %60 = vperm.xlu0 %2946, %v53_v3  }
  0xa7   :  { %v58_v7 = vpop.permute.xlu0 %57 }
  0xa8   :  { %vm62_vm1 = vcmp.eq.s32.totalorder %v55_v6, %v58_v7 }
  0xa9   :  { %v2482_v9 = vsel %vm62_vm1, 1.0, %v3155_v1 }
  0xab   :  { %v61_v8 = vpop.permute.xlu0 %60 }
  0xac   :  { %vm63_vm2 = vcmp.eq.s32.totalorder %v55_v6, %v61_v8 }
  0xad   :  { %v2483_v10 = vsel %vm63_vm2, 1.0, %v3155_v1 }
  0xae   :  { %v68_v11 = vpack.c.bf16 %v2483_v10, %v2482_v9 }
  0xb0   :  { %2673 = vmatmul.mubr.msk.bf16.vlgmr.msra.gmra.mrb[0].mxu0 %vm79_vm3, %v68_v11 }
  0xb1   :  { %2680 = vmatprep.mubr.msk.bf16.mxu0 %vm3156_vm0, %v3155_v1  ;;  %2677 = vmatpush3.bf16.msra.mxu0 %v2968_v12 }
  0xb2   :  { %2678 = vmatprep.subr.bf16.mxu0 %v3155_v1 }
  0xb5   :  { %2679 = vmatpush3.bf16.msra.mxu0 %v2969_v13 }
  0xb6   :  { %2684 = vmatprep.subr.bf16.mxu0 %v3155_v1 }
 0x183   :  { %v117_v15 = vpop.f32.mrb[0].mxu0 }
 0x184   :  { %v2674_v17 = vpop.f32.mrb[1].mxu0  ;;  %v3252_v19 = vadd.f32 %v117_v15, %v71_v14 }
 0x185   :  { %v120_v18 = vpop.f32.mrb[2].mxu0 }
 0x186   :  { %v3254_v20 = vadd.f32 %v120_v18, %v72_v16  ;;  %v2675_v21 = vpop.f32.mrb[3].mxu0 }
 0x188   :  { %v167_v22 = vpack.c.bf16 %v3254_v20, %v3252_v19 }
 0x18a   :  { %2681 = vmatmul.mubr.msk.bf16.vlgmr.msra.gmra.mrb[4].mxu0 %vm182_vm4, %v167_v22 }
 0x18b   :  { %2686 = vmatprep.mubr.msk.bf16.mxu0 %vm3156_vm0, %v3155_v1 }
 0x25d   :  { %v220_v24 = vpop.f32.mrb[4].mxu0 }
 0x25e   :  { %v2682_v26 = vpop.f32.mrb[5].mxu0  ;;  %v221_v28 = vadd.f32 %v220_v24, %v168_v23 }
 0x25f   :  { %v223_v27 = vpop.f32.mrb[6].mxu0 }
 0x260   :  { %v224_v29 = vadd.f32 %v223_v27, %v169_v25  ;;  %v2683_v30 = vpop.f32.mrb[7].mxu0 }
 0x262   :  { %v3261_v31 = vpack.c.bf16 %v224_v29, %v221_v28 }
 0x264   :  { %352 = vrot.lane.b32.xlu0 %v3261_v31, %s3157_s9  ;;  %229 = vrot.lane.b32.xlu1 %v3261_v31, %s3158_s10 }
 0x268   :  { %354 = vrot.lane.b32.xlu1 %v3261_v31, %s3159_s11 }
 0x2d6   :  { %v230_v32 = vpop.permute.xlu1 %229  ;;  %v353_v36 = vpop.permute.xlu0 %352 }
 0x2d7   :  { %v235_v33 = vsel %vm79_vm3, %v230_v32, 0 }
 0x2d8   :  { %2685 = vmatpush3.bf16.xpose.msra.mxu0 %v235_v33 }
 0x2d9   :  { %2696 = vmatprep.subr.bf16.mxu0 %v3155_v1 }
 0x2da   :  { %v355_v34 = vpop.permute.xlu1 %354 }
 0x2db   :  { %v360_v35 = vsel %vm79_vm3, %v355_v34, 0  ;;  %v2970_v34 = vld [vmem:[#allocation2] sm:$0xff]  }
 0x2df   :  { %2687 = vmatmul.mubr.msk.bf16.vlgmr.msra.gmra.mrb[8].mxu0 %vm79_vm3, %v3261_v31 }
 0x2e0   :  { %2697 = vmatpush3.bf16.xpose.msra.mxu0 %v360_v35  ;;  %2698 = vmatprep.mubr.msk.bf16.mxu0 %vm3156_vm0, %v3155_v1 }
 0x2e1   :  { %2708 = vmatprep.subr.bf16.mxu0 %v3155_v1 }
 0x2e7   :  { %2699 = vmatmul.mubr.msk.bf16.vlgmr.msra.gmra.mrb[12].mxu0 %vm79_vm3, %v353_v36 }
 0x2e8   :  { %2712 = vmatprep.mubr.msk.bf16.mxu0 %vm3156_vm0, %v3155_v1  ;;  %2709 = vmatpush3.bf16.msra.mxu0 %v2970_v34 }
 0x2e9   :  { %2710 = vmatprep.subr.bf16.mxu0 %v3155_v1 }
 0x3b2   :  { %v271_v37 = vpop.f32.mrb[8].mxu0 }
 0x3b3   :  { %v278_v39 = vmul.f32 0.25, %v271_v37  ;;  %v2688_v40 = vpop.f32.mrb[9].mxu0  ;;  %v2971_v37 = vld [vmem:[#allocation2 + $0x8] sm:$0xff]  }
 0x3b4   :  { %v274_v41 = vpop.f32.mrb[10].mxu0  ;;  %2711 = vmatpush3.bf16.msra.mxu0 %v2971_v37 }
 0x3b5   :  { %v279_v43 = vmul.f32 0.25, %v274_v41  ;;  %v2689_v44 = vpop.f32.mrb[11].mxu0  ;;  %v280_v45 = vadd.f32 %v278_v39, %v127_v38 }
 0x3b7   :  { %v282_v46 = vsel %vm79_vm3, %v280_v45, -inf  ;;  %v281_v47 = vadd.f32 %v279_v43, %v3280_v42 }
 0x3b8   :  { %283 = vmax.xlane.f32.xlu1 %v282_v46 }
 0x3b9   :  { %v285_v48 = vsel %vm79_vm3, %v281_v47, -inf }
 0x3ba   :  { %286 = vmax.xlane.f32.xlu0 %v285_v48  ;;  %v396_v49 = vpop.f32.mrb[12].mxu0 }
 0x3bb   :  { %v403_v50 = vmul.f32 0.25, %v396_v49  ;;  %v2700_v51 = vpop.f32.mrb[13].mxu0 }
 0x3bc   :  { %v399_v52 = vpop.f32.mrb[14].mxu0 }
 0x3bd   :  { %v404_v53 = vmul.f32 0.25, %v399_v52  ;;  %v2701_v54 = vpop.f32.mrb[15].mxu0  ;;  %v405_v55 = vadd.f32 %v403_v50, %v127_v38  ;;  %v488_v52 = vld [vmem:[#allocation4 + $0x18] sm:$0xff] }
 0x3be   :  { %v489_v54 = vld [vmem:[#allocation4 + $0x20] sm:$0xff] }
 0x3bf   :  { %v407_v56 = vsel %vm79_vm3, %v405_v55, -inf  ;;  %v406_v57 = vadd.f32 %v404_v53, %v3280_v42 }
 0x3c0   :  { %408 = vmax.xlane.f32.xlu0 %v407_v56 }
 0x3c1   :  { %v410_v58 = vsel %vm79_vm3, %v406_v57, -inf }
 0x3c2   :  { %411 = vmax.xlane.f32.xlu1 %v410_v58 }
 0x445   :  { %v284_v59 = vpop.xlane.xlu1 %283 }
 0x446   :  { %v288_v60 = vsub.f32 %v280_v45, %v284_v59 }
 0x447   :  { %v287_v61 = vpop.xlane.xlu0 %286 }
 0x448   :  { %v290_v62 = vmul.f32 1.442695, %v288_v60  ;;  %v289_v63 = vsub.f32 %v281_v47, %v287_v61 }
 0x44a   :  { %3008 = vpow2.f32 %v290_v62  ;;  %v292_v0 = vmul.f32 1.442695, %v289_v63 }
 0x44c   :  { %3010 = vpow2.f32 %v292_v0  ;;  %v2972_v0 = vld [vmem:[%s3665_s3 + $0x10] sm:$0xff]  }
 0x44d   :  { %v409_v2 = vpop.xlane.xlu0 %408 }
 0x44e   :  { %v413_v3 = vsub.f32 %v405_v55, %v409_v2 }
 0x44f   :  { %v412_v4 = vpop.xlane.xlu1 %411 }
 0x450   :  { %v415_v5 = vmul.f32 1.442695, %v413_v3  ;;  %v414_v6 = vsub.f32 %v406_v57, %v412_v4 }
 0x452   :  { %3012 = vpow2.f32 %v415_v5  ;;  %v417_v7 = vmul.f32 1.442695, %v414_v6 }
 0x454   :  { %v3009_v8 = vpop.eup %3008  ;;  %3014 = vpow2.f32 %v417_v7 }
 0x455   :  { %v294_v9 = vsel %vm79_vm3, %v3009_v8, 0.0 }
 0x456   :  { %v3011_v10 = vpop.eup %3010  ;;  %295 = vadd.xlane.f32.xlu0 %v294_v9 }
 0x457   :  { %v297_v11 = vsel %vm79_vm3, %v3011_v10, 0.0 }
 0x458   :  { %298 = vadd.xlane.f32.xlu1 %v297_v11 }
 0x45c   :  { %v3013_v12 = vpop.eup %3012 }
 0x45d   :  { %v419_v13 = vsel %vm79_vm3, %v3013_v12, 0.0 }
 0x45e   :  { %v3015_v14 = vpop.eup %3014  ;;  %420 = vadd.xlane.f32.xlu0 %v419_v13 }
 0x45f   :  { %v422_v15 = vsel %vm79_vm3, %v3015_v14, 0.0 }
 0x460   :  { %423 = vadd.xlane.f32.xlu1 %v422_v15 }
 0x471   :  { %430 = vrot.lane.b32.xlu1 %v3261_v31, %s3160_s12 }
 0x474   :  { %305 = vrot.lane.b32.xlu0 %v3261_v31, %s3149_s7 }
 0x4e3   :  { %v296_v16 = vpop.xlane.xlu0 %295 }
 0x4e4   :  { %3016 = vrcp.f32 %v296_v16 }
 0x4e5   :  { %v299_v17 = vpop.xlane.xlu1 %298 }
 0x4e6   :  { %3018 = vrcp.f32 %v299_v17 }
 0x4eb   :  { %v421_v18 = vpop.xlane.xlu0 %420 }
 0x4ec   :  { %3020 = vrcp.f32 %v421_v18 }
 0x4ed   :  { %v424_v21 = vpop.xlane.xlu1 %423 }
 0x4ee   :  { %v3017_v22 = vpop.eup %3016  ;;  %3022 = vrcp.f32 %v424_v21 }
 0x4ef   :  { %v306_v23 = vpop.permute.xlu0 %305  ;;  %v302_v25 = vmul.f32 %v3017_v22, %v3009_v8  ;;  %v3335_v22 = vld [vmem:[%s3664_s2 + $0x8] ss:$0 sps:$4 sm:$0xff]  }
 0x4f0   :  { %v3019_v24 = vpop.eup %3018  ;;  %2691 = vmatpush3.bf16.msra.mxu1 %v306_v23 }
 0x4f1   :  { %2702 = vmatprep.subr.bf16.mxu1 %v3155_v1  ;;  %v303_v26 = vmul.f32 %v3019_v24, %v3011_v10  ;;  %v431_v28 = vpop.permute.xlu1 %430 }
 0x4f3   :  { %v304_v27 = vpack.c.bf16 %v303_v26, %v302_v25  ;;  %v548_v25 = vld [vmem:[#allocation4 + $0x30] sm:$0xff] }
 0x4f5   :  { %2693 = vmatmul.mubr.msk.bf16.vlgmr.msra.gmra.mrb[0].mxu1 %vm79_vm3, %v304_v27  ;;  %v549_v27 = vld [vmem:[#allocation4 + $0x38] sm:$0xff] }
 0x4f6   :  { %v3021_v29 = vpop.eup %3020  ;;  %2703 = vmatpush3.bf16.msra.mxu1 %v431_v28  ;;  %2704 = vmatprep.mubr.msk.bf16.mxu1 %vm3156_vm0, %v3155_v1 }
 0x4f7   :  { %2716 = vmatprep.subr.bf16.mxu1 %v3155_v1  ;;  %v427_v31 = vmul.f32 %v3021_v29, %v3013_v12  ;;  %v3327_v12 = vld [vmem:[%s3664_s2] sm:$0xff]  }
 0x4f8   :  { %v3023_v30 = vpop.eup %3022 }
 0x4f9   :  { %v428_v32 = vmul.f32 %v3023_v30, %v3015_v14  ;;  %v550_v30 = vld [vmem:[#allocation4 + $0x48] sm:$0xff] }
 0x4fb   :  { %v429_v33 = vpack.c.bf16 %v428_v32, %v427_v31  ;;  %v551_v31 = vld [vmem:[#allocation4 + $0x50] sm:$0xff] }
 0x4fd   :  { %2705 = vmatmul.mubr.msk.bf16.vlgmr.msra.gmra.mrb[4].mxu1 %vm79_vm3, %v429_v33 }
 0x4fe   :  { %2720 = vmatprep.mubr.msk.bf16.mxu1 %vm3156_vm0, %v3155_v1  ;;  %2717 = vmatpush3.bf16.msra.mxu1 %v2972_v0 }
 0x4ff   :  { %2718 = vmatprep.subr.bf16.mxu1 %v3155_v1 }
 0x5c8   :  { %v345_v35 = vpop.f32.mrb[0].mxu1 }
 0x5c9   :  { %v2694_v36 = vpop.f32.mrb[1].mxu1 }
 0x5ca   :  { %v348_v38 = vpop.f32.mrb[2].mxu1 }
 0x5cb   :  { %v2695_v39 = vpop.f32.mrb[3].mxu1 }
 0x5cc   :  { %v643_v39 = vld [vmem:[#allocation4 + $0x80] sm:$0xff] }
 0x5d0   :  { %v470_v40 = vpop.f32.mrb[4].mxu1 }
 0x5d1   :  { %v2706_v41 = vpop.f32.mrb[5].mxu1 }
 0x5d2   :  { %v473_v43 = vpop.f32.mrb[6].mxu1 }
 0x5d3   :  { %v2947_v44 = vpack.i.bf16 %v473_v43, %v470_v40  ;;  %v2707_v45 = vpop.f32.mrb[7].mxu1 }
 0x5d4   :  { %v644_v45 = vld [vmem:[#allocation4 + $0x88] sm:$0xff] }
 0x5d5   :  { %2948 = vrot.lane.b32.xlu1 %v2947_v44, %s3161_s13 }
 0x647   :  { %v2949_v46 = vpop.permute.xlu1 %2948 }
 0x648   :  { %v2951_v47 = vunpack.i.h.bf16 %v2949_v46  ;;  %v2950_v48 = vunpack.i.l.bf16 %v2949_v46 }
 0x64a   :  { %v486_v49 = vsel %vm79_vm3, %v348_v38, %v2951_v47  ;;  %v485_v50 = vsel %vm79_vm3, %v345_v35, %v2950_v48  ;;  %v642_v38 = vld [vmem:[#allocation4 + $0x78] sm:$0xff] }
 0x64b   :  { %v487_v51 = vpack.c.bf16 %v486_v49, %v485_v50  ;;  %v584_v50 = vld [vmem:[#allocation4 + $0x60] sm:$0xff] }
 0x64d   :  { %2713 = vmatmul.mubr.msk.bf16.vlgmr.msra.gmra.mrb[16].mxu0 %vm182_vm4, %v487_v51 }
 0x64e   :  { %2728 = vmatprep.mubr.msk.bf16.mxu0 %vm182_vm4, %v3327_v12 }
 0x720   :  { %v539_v53 = vpop.f32.mrb[16].mxu0 }
 0x721   :  { %v540_v55 = vadd.f32 %v539_v53, %v488_v52  ;;  %v2714_v56 = vpop.f32.mrb[17].mxu0  ;;  %v585_v52 = vld [vmem:[#allocation4 + $0x68] sm:$0xff] }
 0x722   :  { %v542_v57 = vpop.f32.mrb[18].mxu0 }
 0x723   :  { %v543_v58 = vadd.f32 %v542_v57, %v489_v54  ;;  %v2715_v59 = vpop.f32.mrb[19].mxu0  ;;  %v546_v60 = vadd.f32 %v540_v55, %v3252_v19  ;;  %v2973_v19 = vld [vmem:[%s3665_s3 + $0x18] sm:$0xff]  }
 0x724   :  { %2719 = vmatpush3.bf16.msra.mxu1 %v2973_v19 }
 0x725   :  { %v552_v61 = vsel %vm182_vm4, %v546_v60, 0.0  ;;  %v547_v62 = vadd.f32 %v543_v58, %v3254_v20  ;;  %2732 = vmatprep.subr.bf16.mxu1 %v3155_v1 }
 0x726   :  { %553 = vadd.xlane.f32.xlu0 %v552_v61  ;;  %v3364_v61 = vld [vmem:[#allocation4 + $0x2b8] sm:$0xff] }
 0x727   :  { %v555_v63 = vsel %vm182_vm4, %v547_v62, 0.0 }
 0x728   :  { %556 = vadd.xlane.f32.xlu1 %v555_v63 }
 0x739   :  { %653 = vrot.lane.b32.xlu1 %v2972_v0, %s3158_s10 }
 0x7b3   :  { %v554_v20 = vpop.xlane.xlu0 %553 }
 0x7b4   :  { %v559_v2 = vmul.f32 0.03125, %v554_v20 }
 0x7b5   :  { %v557_v3 = vpop.xlane.xlu1 %556 }
 0x7b6   :  { %v561_v4 = vsub.f32 %v546_v60, %v559_v2  ;;  %v560_v5 = vmul.f32 0.03125, %v557_v3 }
 0x7b8   :  { %v562_v6 = vsub.f32 %v547_v62, %v560_v5  ;;  %v563_v7 = vmul.f32 %v561_v4, %v561_v4 }
 0x7b9   :  { %v654_v11 = vpop.permute.xlu1 %653 }
 0x7ba   :  { %v565_v8 = vsel %vm182_vm4, %v563_v7, 0.0  ;;  %v564_v9 = vmul.f32 %v562_v6, %v562_v6  ;;  %2724 = vmatprep.subr.bf16.mxu0 %v654_v11 }
 0x7bb   :  { %566 = vadd.xlane.f32.xlu0 %v565_v8  ;;  %2725 = vmatpush3.bf16.msra.mxu0 %v654_v11 }
 0x7bc   :  { %v568_v10 = vsel %vm182_vm4, %v564_v9, 0.0 }
 0x7bf   :  { %569 = vadd.xlane.f32.xlu0 %v568_v10 }
 0x7d5   :  { %655 = vrot.lane.b32.xlu0 %v2973_v19, %s3158_s10  ;;  %v3366_v19 = vld [vmem:[#allocation4 + $0x2c0] sm:$0xff] }
 0x848   :  { %v567_v13 = vpop.xlane.xlu0 %566 }
 0x849   :  { %v571_v14 = vmul.f32 0.03125, %v567_v13 }
 0x84b   :  { %v573_v15 = vadd.f32 1e-05, %v571_v14 }
 0x84c   :  { %v570_v16 = vpop.xlane.xlu0 %569 }
 0x84d   :  { %3024 = vrsqrt.f32 %v573_v15  ;;  %v572_v17 = vmul.f32 0.03125, %v570_v16 }
 0x84f   :  { %v574_v18 = vadd.f32 1e-05, %v572_v17 }
 0x850   :  { %v656_v21 = vpop.permute.xlu0 %655 }
 0x851   :  { %3026 = vrsqrt.f32 %v574_v18  ;;  %2726 = vmatprep.subr.bf16.mxu0 %v656_v21 }
 0x852   :  { %2727 = vmatpush3.bf16.msra.mxu0 %v656_v21 }
 0x853   :  { %2740 = vmatprep.subr.bf16.mxu0 %v3155_v1 }
 0x855   :  { %2729 = vmatmul.mubr.msk.bf16.vlgmr.msra.gmra.mrb[20].mxu0 %vm182_vm4, %v3335_v22 }
 0x856   :  { %2744 = vmatprep.mubr.msk.bf16.mxu0 %vm3156_vm0, %v3155_v1 }
 0x857   :  { %v3025_v23 = vpop.eup %3024 }
 0x858   :  { %v577_v24 = vmul.f32 %v3025_v23, %v561_v4 }
 0x85a   :  { %v579_v28 = vmul.f32 %v577_v24, %v548_v25 }
 0x85b   :  { %v3027_v26 = vpop.eup %3026 }
 0x85c   :  { %v578_v29 = vmul.f32 %v3027_v26, %v562_v6  ;;  %v3342_v33 = vadd.f32 %v579_v28, %v550_v30 }
 0x85e   :  { %v580_v32 = vmul.f32 %v578_v29, %v549_v27 }
 0x860   :  { %v3344_v34 = vadd.f32 %v580_v32, %v551_v31 }
 0x862   :  { %v583_v35 = vpack.c.bf16 %v3344_v34, %v3342_v33 }
 0x864   :  { %2721 = vmatmul.mubr.msk.bf16.vlgmr.msra.gmra.mrb[8].mxu1 %vm182_vm4, %v583_v35 }
 0x865   :  { %2736 = vmatprep.mubr.msk.bf16.mxu1 %vm3156_vm0, %v3155_v1 }
 0x928   :  { %v2730_v36 = vpop.f32.mrb[20].mxu0 }
 0x929   :  { %v699_v37 = vpop.f32.mrb[21].mxu0  ;;  %v708_v47 = vadd.f32 %v2730_v36, %v644_v45 }
 0x92a   :  { %v2731_v40 = vpop.f32.mrb[22].mxu0  ;;  %v700_v43 = vadd.f32 %v699_v37, %v642_v38 }
 0x92b   :  { %v702_v41 = vpop.f32.mrb[23].mxu0  ;;  %v3356_v49 = vpack.c.bf16 %v708_v47, %v708_v47 }
 0x92c   :  { %v703_v44 = vadd.f32 %v702_v41, %v643_v39 }
 0x92d   :  { %v723_v54 = vsel %vm79_vm3, %v3356_v49, 0 }
 0x92e   :  { %v3351_v46 = vpack.c.bf16 %v703_v44, %v700_v43 }
 0x930   :  { %v720_v48 = vsel %vm79_vm3, %v3351_v46, 0 }
 0x931   :  { %2733 = vmatpush3.bf16.xpose.msra.mxu1 %v720_v48 }
 0x932   :  { %2734 = vmatprep.subr.bf16.mxu1 %v3155_v1 }
 0x937   :  { %v635_v51 = vpop.f32.mrb[8].mxu1 }
 0x938   :  { %v2722_v53 = vpop.f32.mrb[9].mxu1  ;;  %v636_v56 = vadd.f32 %v635_v51, %v584_v50 }
 0x939   :  { %v638_v55 = vpop.f32.mrb[10].mxu1  ;;  %2735 = vmatpush3.bf16.xpose.msra.mxu1 %v723_v54 }
 0x93a   :  { %v639_v57 = vadd.f32 %v638_v55, %v585_v52  ;;  %v2723_v58 = vpop.f32.mrb[11].mxu1  ;;  %2756 = vmatprep.subr.bf16.mxu1 %v3155_v1 }
 0x93c   :  { %v713_v59 = vpack.c.bf16 %v639_v57, %v636_v56 }
 0x940   :  { %2737 = vmatmul.mubr.msk.bf16.vlgmr.msra.gmra.mrb[12].mxu1 %vm79_vm3, %v713_v59 }
 0x941   :  { %2760 = vmatprep.mubr.msk.bf16.mxu1 %vm3156_vm0, %v3155_v1 }
 0xa13   :  { %v759_v60 = vpop.f32.mrb[12].mxu1 }
 0xa14   :  { %v766_v62 = vmul.f32 0.25, %v759_v60  ;;  %v2738_v63 = vpop.f32.mrb[13].mxu1 }
 0xa15   :  { %v762_v0 = vpop.f32.mrb[14].mxu1 }
 0xa16   :  { %v767_v20 = vmul.f32 0.25, %v762_v0  ;;  %v2739_v2 = vpop.f32.mrb[15].mxu1  ;;  %v768_v3 = vadd.f32 %v766_v62, %v3364_v61 }
 0xa18   :  { %v771_v4 = vsel %vm770_vm5, %v768_v3, -inf  ;;  %v769_v5 = vadd.f32 %v767_v20, %v3366_v19 }
 0xa19   :  { %772 = vmax.xlane.f32.xlu1 %v771_v4 }
 0xa1a   :  { %v774_v6 = vsel %vm770_vm5, %v769_v5, -inf }
 0xa1b   :  { %775 = vmax.xlane.f32.xlu0 %v774_v6 }
 0xa2a   :  { %796 = vrot.lane.b32.xlu1 %v3351_v46, %s3158_s10 }
 0xaa6   :  { %v773_v7 = vpop.xlane.xlu1 %772 }
 0xaa7   :  { %v777_v8 = vsub.f32 %v768_v3, %v773_v7 }
 0xaa8   :  { %v776_v9 = vpop.xlane.xlu0 %775 }
 0xaa9   :  { %v779_v10 = vmul.f32 1.442695, %v777_v8  ;;  %v778_v11 = vsub.f32 %v769_v5, %v776_v9 }
 0xaaa   :  { %v797_v13 = vpop.permute.xlu1 %796 }
 0xaab   :  { %3028 = vpow2.f32 %v779_v10  ;;  %v781_v14 = vmul.f32 1.442695, %v778_v11  ;;  %2741 = vmatpush3.bf16.msra.mxu0 %v797_v13  ;;  %v2977_v11 = vld [vmem:[#allocation2 + $0x18] sm:$0xff]  }
 0xaac   :  { %2742 = vmatprep.subr.bf16.mxu0 %v3155_v1 }
 0xaad   :  { %3030 = vpow2.f32 %v781_v14 }
 0xab5   :  { %v3029_v15 = vpop.eup %3028 }
 0xab6   :  { %v783_v16 = vsel %vm770_vm5, %v3029_v15, 0.0 }
 0xab7   :  { %v3031_v17 = vpop.eup %3030  ;;  %784 = vadd.xlane.f32.xlu1 %v783_v16 }
 0xab8   :  { %v786_v18 = vsel %vm770_vm5, %v3031_v17, 0.0 }
 0xab9   :  { %787 = vadd.xlane.f32.xlu0 %v786_v18 }
 0xac8   :  { %852 = vrot.lane.b32.xlu1 %v3351_v46, %s3157_s9 }
 0xacc   :  { %854 = vrot.lane.b32.xlu1 %v3356_v49, %s3157_s9 }
 0xacf   :  { %798 = vrot.lane.b32.xlu0 %v3356_v49, %s3158_s10 }
 0xad3   :  { %850 = vrot.lane.b32.xlu0 %v713_v59, %s3157_s9 }
 0xb44   :  { %v785_v21 = vpop.xlane.xlu1 %784 }
 0xb45   :  { %3032 = vrcp.f32 %v785_v21 }
 0xb46   :  { %v788_v23 = vpop.xlane.xlu0 %787 }
 0xb47   :  { %3034 = vrcp.f32 %v788_v23 }
 0xb48   :  { %v853_v30 = vpop.permute.xlu1 %852 }
 0xb49   :  { %v860_v32 = vsel %vm79_vm3, %v853_v30, 0 }
 0xb4a   :  { %v799_v24 = vpop.permute.xlu0 %798 }
 0xb4b   :  { %v806_v25 = vsel %vm804_vm6, %v799_v24, 0 }
 0xb4c   :  { %2743 = vmatpush3.bf16.msra.mxu0 %v806_v25  ;;  %v855_v35 = vpop.permute.xlu1 %854 }
 0xb4d   :  { %2748 = vmatprep.subr.bf16.mxu0 %v3155_v1  ;;  %v863_v36 = vsel %vm79_vm3, %v855_v35, 0 }
 0xb4e   :  { %v851_v37 = vpop.permute.xlu0 %850 }
 0xb4f   :  { %v3033_v26 = vpop.eup %3032 }
 0xb50   :  { %v791_v28 = vmul.f32 %v3033_v26, %v3029_v15 }
 0xb51   :  { %v3035_v27 = vpop.eup %3034 }
 0xb52   :  { %v792_v29 = vmul.f32 %v3035_v27, %v3031_v17  ;;  %v996_v27 = vld [vmem:[#allocation4 + $0x90] sm:$0xff] }
 0xb54   :  { %v793_v31 = vpack.c.bf16 %v792_v29, %v791_v28  ;;  %v997_v29 = vld [vmem:[#allocation4 + $0x98] sm:$0xff] }
 0xb56   :  { %2745 = vmatmul.mubr.msk.bf16.vlgmr.msra.gmra.mrb[24].mxu0 %vm770_vm5, %v793_v31 }
 0xb57   :  { %2749 = vmatpush3.bf16.xpose.msra.mxu0 %v860_v32  ;;  %2752 = vmatprep.mubr.msk.bf16.mxu0 %vm3156_vm0, %v3155_v1 }
 0xb58   :  { %2750 = vmatprep.subr.bf16.mxu0 %v3155_v1 }
 0xb5f   :  { %2751 = vmatpush3.bf16.xpose.msra.mxu0 %v863_v36 }
 0xb60   :  { %2772 = vmatprep.subr.bf16.mxu0 %v3155_v1 }
 0xb66   :  { %2753 = vmatmul.mubr.msk.bf16.vlgmr.msra.gmra.mrb[28].mxu0 %vm79_vm3, %v851_v37 }
 0xb67   :  { %2776 = vmatprep.mubr.msk.bf16.mxu0 %vm3156_vm0, %v3155_v1 }
 0xc29   :  { %v3396_v38 = vpop.f32.mrb[24].mxu0 }
 0xc2a   :  { %v2746_v39 = vpop.f32.mrb[25].mxu0 }
 0xc2b   :  { %v3398_v40 = vpop.f32.mrb[26].mxu0 }
 0xc2c   :  { %v2747_v41 = vpop.f32.mrb[27].mxu0 }
 0xc39   :  { %v899_v43 = vpop.f32.mrb[28].mxu0 }
 0xc3a   :  { %v906_v44 = vmul.f32 0.25, %v899_v43  ;;  %v2754_v45 = vpop.f32.mrb[29].mxu0 }
 0xc3b   :  { %v902_v47 = vpop.f32.mrb[30].mxu0 }
 0xc3c   :  { %v907_v48 = vmul.f32 0.25, %v902_v47  ;;  %v2755_v50 = vpop.f32.mrb[31].mxu0  ;;  %v908_v51 = vadd.f32 %v906_v44, %v3364_v61 }
 0xc3e   :  { %v910_v52 = vsel %vm770_vm5, %v908_v51, -inf  ;;  %v909_v53 = vadd.f32 %v907_v48, %v3366_v19 }
 0xc3f   :  { %911 = vmax.xlane.f32.xlu1 %v910_v52 }
 0xc40   :  { %v913_v54 = vsel %vm770_vm5, %v909_v53, -inf }
 0xc41   :  { %914 = vmax.xlane.f32.xlu0 %v913_v54  ;;  %v2980_v54 = vld [vmem:[#allocation2 + $0x20] sm:$0xff]  }
 0xccc   :  { %v912_v55 = vpop.xlane.xlu1 %911 }
 0xccd   :  { %v916_v56 = vsub.f32 %v908_v51, %v912_v55  ;;  %v2981_v55 = vld [vmem:[#allocation2 + $0x28] sm:$0xff]  }
 0xcce   :  { %v915_v57 = vpop.xlane.xlu0 %914 }
 0xccf   :  { %v918_v58 = vmul.f32 1.442695, %v916_v56  ;;  %v917_v59 = vsub.f32 %v909_v53, %v915_v57  ;;  %v2979_v53 = vld [vmem:[%s3665_s3 + $0x28] sm:$0xff]   ;;  %v2982_v56 = vld [vmem:[#allocation2 + $0x30] sm:$0xff]   ;;  %v2983_v57 = vld [vmem:[#allocation2 + $0x38] sm:$0xff]  }
 0xcd1   :  { %3036 = vpow2.f32 %v918_v58  ;;  %v920_v60 = vmul.f32 1.442695, %v917_v59  ;;  %v2984_v58 = vld [vmem:[#allocation2 + $0x40] sm:$0xff]   ;;  %v2985_v59 = vld [vmem:[#allocation2 + $0x48] sm:$0xff]  }
 0xcd3   :  { %3038 = vpow2.f32 %v920_v60 }
 0xcdb   :  { %v3037_v62 = vpop.eup %3036 }
 0xcdc   :  { %v922_v63 = vsel %vm770_vm5, %v3037_v62, 0.0 }
 0xcdd   :  { %v3039_v0 = vpop.eup %3038  ;;  %923 = vadd.xlane.f32.xlu0 %v922_v63 }
 0xcde   :  { %v925_v20 = vsel %vm770_vm5, %v3039_v0, 0.0 }
 0xcdf   :  { %926 = vadd.xlane.f32.xlu1 %v925_v20 }
 0xcf0   :  { %935 = vrot.lane.b32.xlu1 %v3356_v49, %s3159_s11 }
 0xcf3   :  { %933 = vrot.lane.b32.xlu0 %v3351_v46, %s3159_s11  ;;  %v2976_v46 = vld [vmem:[#allocation2 + $0x10] sm:$0xff]  }
 0xd6a   :  { %v924_v2 = vpop.xlane.xlu0 %923 }
 0xd6b   :  { %3040 = vrcp.f32 %v924_v2 }
 0xd6c   :  { %v927_v3 = vpop.xlane.xlu1 %926 }
 0xd6d   :  { %3042 = vrcp.f32 %v927_v3 }
 0xd6e   :  { %v934_v4 = vpop.permute.xlu0 %933 }
 0xd6f   :  { %2757 = vmatpush3.bf16.msra.mxu1 %v934_v4 }
 0xd70   :  { %v936_v5 = vpop.permute.xlu1 %935  ;;  %2758 = vmatprep.subr.bf16.mxu1 %v3155_v1 }
 0xd71   :  { %v942_v6 = vsel %vm804_vm6, %v936_v5, 0  ;;  %v1056_v5 = vld [vmem:[#allocation4 + $0xa8] sm:$0xff] }
 0xd73   :  { %2759 = vmatpush3.bf16.msra.mxu1 %v942_v6 }
 0xd74   :  { %2764 = vmatprep.subr.bf16.mxu1 %v3155_v1 }
 0xd75   :  { %v3041_v7 = vpop.eup %3040 }
 0xd76   :  { %v930_v49 = vmul.f32 %v3041_v7, %v3037_v62  ;;  %v1057_v7 = vld [vmem:[#allocation4 + $0xb0] sm:$0xff] }
 0xd77   :  { %v3043_v8 = vpop.eup %3042 }
 0xd78   :  { %v931_v9 = vmul.f32 %v3043_v8, %v3039_v0 }
 0xd7a   :  { %v932_v10 = vpack.c.bf16 %v931_v9, %v930_v49  ;;  %v1058_v9 = vld [vmem:[#allocation4 + $0xc0] sm:$0xff] }
 0xd7c   :  { %2761 = vmatmul.mubr.msk.bf16.vlgmr.msra.gmra.mrb[16].mxu1 %vm770_vm5, %v932_v10  ;;  %v1059_v10 = vld [vmem:[#allocation4 + $0xc8] sm:$0xff] }
 0xd7d   :  { %2768 = vmatprep.mubr.msk.bf16.mxu1 %vm3156_vm0, %v3155_v1  ;;  %2765 = vmatpush3.bf16.msra.mxu1 %v2976_v46 }
 0xd7e   :  { %2766 = vmatprep.subr.bf16.mxu1 %v3155_v1 }
 0xd81   :  { %2767 = vmatpush3.bf16.msra.mxu1 %v2977_v11 }
 0xd82   :  { %2780 = vmatprep.subr.bf16.mxu1 %v3155_v1 }
 0xe4f   :  { %v978_v13 = vpop.f32.mrb[16].mxu1 }
 0xe50   :  { %v2762_v14 = vpop.f32.mrb[17].mxu1 }
 0xe51   :  { %v981_v15 = vpop.f32.mrb[18].mxu1 }
 0xe52   :  { %v2952_v16 = vpack.i.bf16 %v981_v15, %v978_v13  ;;  %v2763_v17 = vpop.f32.mrb[19].mxu1  ;;  %v2986_v15 = vld [vmem:[#allocation2 + $0x50] sm:$0xff]  }
 0xe53   :  { %v1091_v17 = vld [vmem:[#allocation4 + $0xd8] sm:$0xff] }
 0xe54   :  { %2953 = vrot.lane.b32.xlu1 %v2952_v16, %s3161_s13  ;;  %v2987_v16 = vld [vmem:[#allocation2 + $0x58] sm:$0xff]  }
 0xec6   :  { %v2954_v18 = vpop.permute.xlu1 %2953 }
 0xec7   :  { %v2956_v21 = vunpack.i.h.bf16 %v2954_v18  ;;  %v2955_v23 = vunpack.i.l.bf16 %v2954_v18 }
 0xec9   :  { %v994_v24 = vsel %vm79_vm3, %v3398_v40, %v2956_v21  ;;  %v993_v25 = vsel %vm79_vm3, %v3396_v38, %v2955_v23  ;;  %v1092_v21 = vld [vmem:[#allocation4 + $0xe0] sm:$0xff] }
 0xeca   :  { %v995_v26 = vpack.c.bf16 %v994_v24, %v993_v25 }
 0xecc   :  { %2769 = vmatmul.mubr.msk.bf16.vlgmr.msra.gmra.mrb[20].mxu1 %vm182_vm4, %v995_v26 }
 0xecd   :  { %2796 = vmatprep.mubr.msk.bf16.mxu1 %vm3156_vm0, %v3155_v1  ;;  %2781 = vmatpush3.bf16.msra.mxu1 %v2980_v54 }
 0xece   :  { %2782 = vmatprep.subr.bf16.mxu1 %v3155_v1 }
 0xed1   :  { %2783 = vmatpush3.bf16.msra.mxu1 %v2981_v55 }
 0xed2   :  { %2784 = vmatprep.subr.bf16.mxu1 %v3155_v1 }
 0xed5   :  { %2785 = vmatpush3.bf16.msra.mxu1 %v2982_v56  ;;  %v2988_v56 = vld [vmem:[%s3665_s3 + $0x30] sm:$0xff]  }
 0xed6   :  { %2786 = vmatprep.subr.bf16.mxu1 %v3155_v1 }
 0xed9   :  { %2787 = vmatpush3.bf16.msra.mxu1 %v2983_v57  ;;  %v2989_v57 = vld [vmem:[%s3665_s3 + $0x38] sm:$0xff]  }
 0xeda   :  { %2788 = vmatprep.subr.bf16.mxu1 %v3155_v1 }
 0xedd   :  { %2789 = vmatpush3.bf16.msra.mxu1 %v2984_v58 }
 0xede   :  { %2790 = vmatprep.subr.bf16.mxu1 %v3155_v1 }
 0xee1   :  { %2791 = vmatpush3.bf16.msra.mxu1 %v2985_v59 }
 0xee2   :  { %2792 = vmatprep.subr.bf16.mxu1 %v3155_v1 }
 0xee5   :  { %2793 = vmatpush3.bf16.msra.mxu1 %v2986_v15  ;;  %v1319_v15 = vld [vmem:[#allocation4 + $0x140] sm:$0xff] }
 0xee6   :  { %2794 = vmatprep.subr.bf16.mxu1 %v3155_v1 }
 0xee9   :  { %2795 = vmatpush3.bf16.msra.mxu1 %v2987_v16 }
 0xeea   :  { %2826 = vmatprep.subr.bf16.mxu1 %v3155_v1 }
 0xf9f   :  { %v1047_v28 = vpop.f32.mrb[20].mxu1 }
 0xfa0   :  { %v1048_v30 = vadd.f32 %v1047_v28, %v996_v27  ;;  %v2770_v31 = vpop.f32.mrb[21].mxu1 }
 0xfa1   :  { %v1050_v32 = vpop.f32.mrb[22].mxu1  ;;  %v1152_v31 = vld [vmem:[#allocation4 + $0xf0] sm:$0xff] }
 0xfa2   :  { %v1051_v35 = vadd.f32 %v1050_v32, %v997_v29  ;;  %v2771_v36 = vpop.f32.mrb[23].mxu1  ;;  %v1054_v37 = vadd.f32 %v1048_v30, %v3342_v33 }
 0xfa4   :  { %v1060_v39 = vsel %vm182_vm4, %v1054_v37, 0.0  ;;  %v1055_v38 = vadd.f32 %v1051_v35, %v3344_v34  ;;  %v2978_v34 = vld [vmem:[%s3665_s3 + $0x20] sm:$0xff]   ;;  %v1153_v35 = vld [vmem:[#allocation4 + $0xf8] sm:$0xff] }
 0xfa5   :  { %1061 = vadd.xlane.f32.xlu0 %v1060_v39  ;;  %2773 = vmatpush3.bf16.msra.mxu0 %v2978_v34 }
 0xfa6   :  { %v1063_v40 = vsel %vm182_vm4, %v1055_v38, 0.0  ;;  %2774 = vmatprep.subr.bf16.mxu0 %v3155_v1 }
 0xfa7   :  { %1064 = vadd.xlane.f32.xlu1 %v1063_v40 }
 0xfa9   :  { %2775 = vmatpush3.bf16.msra.mxu0 %v2979_v53 }
 0xfaa   :  { %2800 = vmatprep.subr.bf16.mxu0 %v3155_v1 }
0x1032   :  { %v1062_v41 = vpop.xlane.xlu0 %1061 }
0x1033   :  { %v1066_v43 = vmul.f32 0.03125, %v1062_v41 }
0x1034   :  { %v1065_v44 = vpop.xlane.xlu1 %1064 }
0x1035   :  { %v1068_v45 = vsub.f32 %v1054_v37, %v1066_v43  ;;  %v1067_v47 = vmul.f32 0.03125, %v1065_v44 }
0x1037   :  { %v1069_v48 = vsub.f32 %v1055_v38, %v1067_v47  ;;  %v1070_v50 = vmul.f32 %v1068_v45, %v1068_v45 }
0x1039   :  { %v1072_v51 = vsel %vm182_vm4, %v1070_v50, 0.0  ;;  %v1071_v52 = vmul.f32 %v1069_v48, %v1069_v48 }
0x103a   :  { %1073 = vadd.xlane.f32.xlu0 %v1072_v51 }
0x103b   :  { %v1075_v33 = vsel %vm182_vm4, %v1071_v52, 0.0 }
0x103e   :  { %1076 = vadd.xlane.f32.xlu0 %v1075_v33 }
0x10c7   :  { %v1074_v60 = vpop.xlane.xlu0 %1073 }
0x10c8   :  { %v1078_v62 = vmul.f32 0.03125, %v1074_v60 }
0x10ca   :  { %v1080_v63 = vadd.f32 1e-05, %v1078_v62 }
0x10cb   :  { %v1077_v0 = vpop.xlane.xlu0 %1076 }
0x10cc   :  { %3044 = vrsqrt.f32 %v1080_v63  ;;  %v1079_v20 = vmul.f32 0.03125, %v1077_v0 }
0x10ce   :  { %v1081_v2 = vadd.f32 1e-05, %v1079_v20 }
0x10d0   :  { %3046 = vrsqrt.f32 %v1081_v2  ;;  %v1245_v2 = vld [vmem:[#allocation4 + $0x108] sm:$0xff] }
0x10d6   :  { %v3045_v3 = vpop.eup %3044 }
0x10d7   :  { %v1084_v4 = vmul.f32 %v3045_v3, %v1068_v45 }
0x10d9   :  { %v1086_v8 = vmul.f32 %v1084_v4, %v1056_v5  ;;  %v1246_v5 = vld [vmem:[#allocation4 + $0x110] sm:$0xff] }
0x10da   :  { %v3047_v6 = vpop.eup %3046 }
0x10db   :  { %v1085_v49 = vmul.f32 %v3047_v6, %v1069_v48  ;;  %v1088_v11 = vadd.f32 %v1086_v8, %v1058_v9  ;;  %v1247_v8 = vld [vmem:[#allocation4 + $0x120] sm:$0xff] }
0x10dd   :  { %v1087_v46 = vmul.f32 %v1085_v49, %v1057_v7  ;;  %v1248_v49 = vld [vmem:[#allocation4 + $0x128] sm:$0xff] }
0x10df   :  { %v1089_v13 = vadd.f32 %v1087_v46, %v1059_v10 }
0x10e1   :  { %v1090_v14 = vpack.c.bf16 %v1089_v13, %v1088_v11 }
0x10e3   :  { %2777 = vmatmul.mubr.msk.bf16.vlgmr.msra.gmra.mrb[32].mxu0 %vm182_vm4, %v1090_v14 }
0x10e4   :  { %2804 = vmatprep.mubr.msk.bf16.mxu0 %vm3156_vm0, %v3155_v1  ;;  %2801 = vmatpush3.bf16.msra.mxu0 %v2988_v56 }
0x10e5   :  { %2802 = vmatprep.subr.bf16.mxu0 %v3155_v1 }
0x10e8   :  { %2803 = vmatpush3.bf16.msra.mxu0 %v2989_v57 }
0x10e9   :  { %2808 = vmatprep.subr.bf16.mxu0 %v3155_v1 }
0x11b6   :  { %v1142_v18 = vpop.f32.mrb[32].mxu0 }
0x11b7   :  { %v1143_v23 = vadd.f32 %v1142_v18, %v1091_v17  ;;  %v2778_v24 = vpop.f32.mrb[33].mxu0 }
0x11b8   :  { %v1145_v25 = vpop.f32.mrb[34].mxu0 }
0x11b9   :  { %v1146_v26 = vadd.f32 %v1145_v25, %v1092_v21  ;;  %v2779_v27 = vpop.f32.mrb[35].mxu0  ;;  %v1149_v28 = vmax.f32 %v1143_v23, 0.0 }
0x11bb   :  { %v1150_v29 = vmax.f32 %v1146_v26, 0.0 }
0x11bd   :  { %v1151_v30 = vpack.c.bf16 %v1150_v29, %v1149_v28 }
0x11bf   :  { %2797 = vmatmul.mubr.bf16.vlgmr.msra.gmra.mrb[24].mxu1 %v1151_v30 }
0x11c0   :  { %2828 = vmatprep.mubr.msk.bf16.mxu1 %vm3156_vm0, %v3155_v1 }
0x1292   :  { %v1236_v32 = vpop.f32.mrb[24].mxu1 }
0x1293   :  { %v1237_v36 = vadd.f32 %v1236_v32, %v1152_v31  ;;  %v2798_v37 = vpop.f32.mrb[25].mxu1 }
0x1294   :  { %v1239_v39 = vpop.f32.mrb[26].mxu1 }
0x1295   :  { %v1240_v38 = vadd.f32 %v1239_v39, %v1153_v35  ;;  %v2799_v40 = vpop.f32.mrb[27].mxu1  ;;  %v1243_v41 = vadd.f32 %v1237_v36, %v1088_v11  ;;  %v3096_v36 = vld [vmem:[#allocation4 + $0x2a0] sm:$0xff] }
0x1297   :  { %v1249_v43 = vsel %vm182_vm4, %v1243_v41, 0.0  ;;  %v1244_v44 = vadd.f32 %v1240_v38, %v1089_v13  ;;  %v1318_v13 = vld [vmem:[#allocation4 + $0x138] sm:$0xff] }
0x1298   :  { %1250 = vadd.xlane.f32.xlu1 %v1249_v43 }
0x1299   :  { %v1252_v45 = vsel %vm182_vm4, %v1244_v44, 0.0 }
0x129a   :  { %1253 = vadd.xlane.f32.xlu0 %v1252_v45 }
0x1325   :  { %v1251_v47 = vpop.xlane.xlu1 %1250 }
0x1326   :  { %v1255_v48 = vmul.f32 0.03125, %v1251_v47 }
0x1327   :  { %v1254_v50 = vpop.xlane.xlu0 %1253 }
0x1328   :  { %v1257_v51 = vsub.f32 %v1243_v41, %v1255_v48  ;;  %v1256_v52 = vmul.f32 0.03125, %v1254_v50 }
0x132a   :  { %v1258_v33 = vsub.f32 %v1244_v44, %v1256_v52  ;;  %v1259_v34 = vmul.f32 %v1257_v51, %v1257_v51 }
0x132c   :  { %v1261_v53 = vsel %vm182_vm4, %v1259_v34, 0.0  ;;  %v1260_v54 = vmul.f32 %v1258_v33, %v1258_v33 }
0x132d   :  { %1262 = vadd.xlane.f32.xlu1 %v1261_v53 }
0x132e   :  { %v1264_v55 = vsel %vm182_vm4, %v1260_v54, 0.0 }
0x132f   :  { %1265 = vadd.xlane.f32.xlu0 %v1264_v55 }
0x13ba   :  { %v1263_v58 = vpop.xlane.xlu1 %1262 }
0x13bb   :  { %v1267_v59 = vmul.f32 0.03125, %v1263_v58 }
0x13bc   :  { %v1266_v60 = vpop.xlane.xlu0 %1265 }
0x13bd   :  { %v1269_v62 = vadd.f32 1e-05, %v1267_v59  ;;  %v1268_v63 = vmul.f32 0.03125, %v1266_v60 }
0x13bf   :  { %3048 = vrsqrt.f32 %v1269_v62  ;;  %v1270_v0 = vadd.f32 1e-05, %v1268_v63 }
0x13c1   :  { %3050 = vrsqrt.f32 %v1270_v0 }
0x13c9   :  { %v3049_v20 = vpop.eup %3048 }
0x13ca   :  { %v1273_v3 = vmul.f32 %v3049_v20, %v1257_v51 }
0x13cb   :  { %v3051_v4 = vpop.eup %3050 }
0x13cc   :  { %v1275_v6 = vmul.f32 %v1273_v3, %v1245_v2  ;;  %v1274_v7 = vmul.f32 %v3051_v4, %v1258_v33 }
0x13ce   :  { %v1276_v9 = vmul.f32 %v1274_v7, %v1246_v5  ;;  %v3465_v10 = vadd.f32 %v1275_v6, %v1247_v8 }
0x13d0   :  { %v3467_v46 = vadd.f32 %v1276_v9, %v1248_v49  ;;  %v3097_v9 = vld [vmem:[#allocation4 + $0x2a8] sm:$0xff] }
0x13d2   :  { %v1317_v11 = vpack.c.bf16 %v3467_v46, %v3465_v10 }
0x13d4   :  { %2805 = vmatmul.mubr.msk.bf16.vlgmr.msra.gmra.mrb[36].mxu0 %vm182_vm4, %v1317_v11 }
0x13d5   :  { %2810 = vmatprep.mubr.msk.bf16.mxu0 %vm3156_vm0, %v3155_v1 }
0x14a7   :  { %v1369_v14 = vpop.f32.mrb[36].mxu0 }
0x14a8   :  { %v2806_v16 = vpop.f32.mrb[37].mxu0  ;;  %v1370_v18 = vadd.f32 %v1369_v14, %v1318_v13 }
0x14a9   :  { %v1372_v17 = vpop.f32.mrb[38].mxu0 }
0x14aa   :  { %v1373_v21 = vadd.f32 %v1372_v17, %v1319_v15  ;;  %v2807_v23 = vpop.f32.mrb[39].mxu0 }
0x14ac   :  { %v3474_v24 = vpack.c.bf16 %v1373_v21, %v1370_v18 }
0x14ae   :  { %1378 = vrot.lane.b32.xlu1 %v3474_v24, %s3158_s10 }
0x14b2   :  { %1454 = vrot.lane.b32.xlu1 %v3474_v24, %s3149_s7 }
0x14b6   :  { %1501 = vrot.lane.b32.xlu1 %v3474_v24, %s3157_s9 }
0x1520   :  { %v1379_v25 = vpop.permute.xlu1 %1378 }
0x1521   :  { %v1384_v26 = vsel %vm79_vm3, %v1379_v25, 0 }
0x1522   :  { %2809 = vmatpush3.bf16.xpose.msra.mxu0 %v1384_v26 }
0x1523   :  { %2814 = vmatprep.subr.bf16.mxu0 %v3155_v1 }
0x1524   :  { %v1455_v27 = vpop.permute.xlu1 %1454 }
0x1528   :  { %v1502_v60 = vpop.permute.xlu1 %1501 }
0x1529   :  { %2811 = vmatmul.mubr.msk.bf16.vlgmr.msra.gmra.mrb[40].mxu0 %vm79_vm3, %v3474_v24 }
0x152a   :  { %2815 = vmatpush3.bf16.msra.mxu0 %v1455_v27  ;;  %2816 = vmatprep.mubr.msk.bf16.mxu0 %vm3156_vm0, %v3155_v1 }
0x152b   :  { %2820 = vmatprep.subr.bf16.mxu0 %v3155_v1 }
0x15fc   :  { %v1420_v28 = vpop.f32.mrb[40].mxu0 }
0x15fd   :  { %v1427_v29 = vmul.f32 0.25, %v1420_v28  ;;  %v2812_v30 = vpop.f32.mrb[41].mxu0 }
0x15fe   :  { %v1423_v31 = vpop.f32.mrb[42].mxu0 }
0x15ff   :  { %v1428_v32 = vmul.f32 0.25, %v1423_v31  ;;  %v2813_v35 = vpop.f32.mrb[43].mxu0  ;;  %v1429_v37 = vadd.f32 %v3096_v36, %v1427_v29 }
0x1601   :  { %v1431_v39 = vsel %vm79_vm3, %v1429_v37, -inf  ;;  %v1430_v38 = vadd.f32 %v1428_v32, %v3280_v42 }
0x1602   :  { %1432 = vmax.xlane.f32.xlu0 %v1431_v39  ;;  %v2990_v39 = vld [vmem:[#allocation2 + $0x60] sm:$0xff]  }
0x1603   :  { %v1434_v40 = vsel %vm79_vm3, %v1430_v38, -inf }
0x1606   :  { %1435 = vmax.xlane.f32.xlu0 %v1434_v40 }
0x168f   :  { %v1433_v41 = vpop.xlane.xlu0 %1432 }
0x1690   :  { %v1437_v43 = vsub.f32 %v1429_v37, %v1433_v41 }
0x1692   :  { %v1439_v44 = vmul.f32 1.442695, %v1437_v43 }
0x1693   :  { %v1436_v45 = vpop.xlane.xlu0 %1435 }
0x1694   :  { %3052 = vpow2.f32 %v1439_v44  ;;  %v1438_v47 = vsub.f32 %v1430_v38, %v1436_v45 }
0x1696   :  { %v1441_v48 = vmul.f32 1.442695, %v1438_v47 }
0x1698   :  { %3054 = vpow2.f32 %v1441_v48 }
0x169e   :  { %v3053_v50 = vpop.eup %3052 }
0x169f   :  { %v1443_v51 = vsel %vm79_vm3, %v3053_v50, 0.0 }
0x16a0   :  { %1444 = vadd.xlane.f32.xlu0 %v1443_v51 }
0x16a2   :  { %v3055_v52 = vpop.eup %3054 }
0x16a3   :  { %v1446_v33 = vsel %vm79_vm3, %v3055_v52, 0.0 }
0x16a4   :  { %1447 = vadd.xlane.f32.xlu0 %v1446_v33  ;;  %v1637_v33 = vld [vmem:[#allocation4 + $0x150] sm:$0xff] }
0x16ba   :  { %1503 = vrot.lane.b32.xlu0 %v3474_v24, %s3159_s11 }
0x172d   :  { %v1445_v42 = vpop.xlane.xlu0 %1444 }
0x172e   :  { %3056 = vrcp.f32 %v1445_v42 }
0x1731   :  { %v1448_v34 = vpop.xlane.xlu0 %1447 }
0x1732   :  { %3058 = vrcp.f32 %v1448_v34  ;;  %v1638_v34 = vld [vmem:[#allocation4 + $0x158] sm:$0xff] }
0x1735   :  { %v1504_v57 = vpop.permute.xlu0 %1503 }
0x1736   :  { %v1509_v59 = vsel %vm79_vm3, %v1504_v57, 0 }
0x1738   :  { %v3057_v53 = vpop.eup %3056 }
0x1739   :  { %v1451_v55 = vmul.f32 %v3057_v53, %v3053_v50 }
0x173c   :  { %v3059_v54 = vpop.eup %3058 }
0x173d   :  { %v1452_v56 = vmul.f32 %v3059_v54, %v3055_v52 }
0x173f   :  { %v1453_v58 = vpack.c.bf16 %v1452_v56, %v1451_v55 }
0x1741   :  { %2817 = vmatmul.mubr.msk.bf16.vlgmr.msra.gmra.mrb[44].mxu0 %vm79_vm3, %v1453_v58 }
0x1742   :  { %2821 = vmatpush3.bf16.xpose.msra.mxu0 %v1509_v59  ;;  %2822 = vmatprep.mubr.msk.bf16.mxu0 %vm3156_vm0, %v3155_v1 }
0x1743   :  { %2832 = vmatprep.subr.bf16.mxu0 %v3155_v1 }
0x1749   :  { %2823 = vmatmul.mubr.msk.bf16.vlgmr.msra.gmra.mrb[48].mxu0 %vm79_vm3, %v1502_v60 }
0x174a   :  { %2836 = vmatprep.mubr.msk.bf16.mxu0 %vm3156_vm0, %v3155_v1  ;;  %2833 = vmatpush3.bf16.msra.mxu0 %v2990_v39  ;;  %v1791_v39 = vld [vmem:[#allocation4 + $0x1b8] sm:$0xff] }
0x174b   :  { %2834 = vmatprep.subr.bf16.mxu0 %v3155_v1 }
0x1814   :  { %v1494_v62 = vpop.f32.mrb[44].mxu0 }
0x1815   :  { %v2818_v63 = vpop.f32.mrb[45].mxu0 }
0x1816   :  { %v1497_v0 = vpop.f32.mrb[46].mxu0  ;;  %v2993_v63 = vld [vmem:[%s3665_s3 + $0x48] sm:$0xff]  }
0x1817   :  { %v2819_v20 = vpop.f32.mrb[47].mxu0 }
0x181c   :  { %v1545_v2 = vpop.f32.mrb[48].mxu0 }
0x181d   :  { %v1552_v3 = vmul.f32 0.25, %v1545_v2  ;;  %v2824_v4 = vpop.f32.mrb[49].mxu0 }
0x181e   :  { %v1548_v5 = vpop.f32.mrb[50].mxu0 }
0x181f   :  { %v1553_v6 = vmul.f32 0.25, %v1548_v5  ;;  %v2825_v7 = vpop.f32.mrb[51].mxu0  ;;  %v1554_v8 = vadd.f32 %v3096_v36, %v1552_v3 }
0x1821   :  { %v1556_v49 = vsel %vm79_vm3, %v1554_v8, -inf  ;;  %v1555_v11 = vadd.f32 %v3097_v9, %v1553_v6 }
0x1822   :  { %1557 = vmax.xlane.f32.xlu1 %v1556_v49 }
0x1823   :  { %v1559_v13 = vsel %vm79_vm3, %v1555_v11, -inf }
0x1824   :  { %1560 = vmax.xlane.f32.xlu0 %v1559_v13 }
0x18af   :  { %v1558_v14 = vpop.xlane.xlu1 %1557 }
0x18b0   :  { %v1562_v15 = vsub.f32 %v1554_v8, %v1558_v14 }
0x18b1   :  { %v1561_v16 = vpop.xlane.xlu0 %1560 }
0x18b2   :  { %v1564_v17 = vmul.f32 1.442695, %v1562_v15  ;;  %v1563_v18 = vsub.f32 %v1555_v11, %v1561_v16 }
0x18b4   :  { %3060 = vpow2.f32 %v1564_v17  ;;  %v1566_v21 = vmul.f32 1.442695, %v1563_v18  ;;  %v1697_v18 = vld [vmem:[#allocation4 + $0x168] sm:$0xff] }
0x18b6   :  { %3062 = vpow2.f32 %v1566_v21 }
0x18be   :  { %v3061_v23 = vpop.eup %3060 }
0x18bf   :  { %v1568_v25 = vsel %vm79_vm3, %v3061_v23, 0.0 }
0x18c0   :  { %v3063_v26 = vpop.eup %3062  ;;  %1569 = vadd.xlane.f32.xlu1 %v1568_v25  ;;  %v1698_v25 = vld [vmem:[#allocation4 + $0x170] sm:$0xff] }
0x18c1   :  { %v1571_v27 = vsel %vm79_vm3, %v3063_v26, 0.0 }
0x18c4   :  { %1572 = vadd.xlane.f32.xlu1 %v1571_v27 }
0x18d5   :  { %1579 = vrot.lane.b32.xlu1 %v3474_v24, %s3160_s12  ;;  %v2991_v24 = vld [vmem:[#allocation2 + $0x68] sm:$0xff]  }
0x18d6   :  { %2835 = vmatpush3.bf16.msra.mxu0 %v2991_v24 }
0x194d   :  { %v1570_v28 = vpop.xlane.xlu1 %1569 }
0x194e   :  { %3064 = vrcp.f32 %v1570_v28  ;;  %v1699_v28 = vld [vmem:[#allocation4 + $0x180] sm:$0xff] }
0x1951   :  { %v1573_v29 = vpop.xlane.xlu1 %1572 }
0x1952   :  { %3066 = vrcp.f32 %v1573_v29  ;;  %v1700_v29 = vld [vmem:[#allocation4 + $0x188] sm:$0xff] }
0x1955   :  { %v1580_v30 = vpop.permute.xlu1 %1579 }
0x1956   :  { %2827 = vmatpush3.bf16.msra.mxu1 %v1580_v30 }
0x1957   :  { %2840 = vmatprep.subr.bf16.mxu1 %v3155_v1 }
0x1958   :  { %v3065_v31 = vpop.eup %3064 }
0x1959   :  { %v1576_v35 = vmul.f32 %v3065_v31, %v3061_v23 }
0x195c   :  { %v3067_v32 = vpop.eup %3066 }
0x195d   :  { %v1577_v36 = vmul.f32 %v3067_v32, %v3063_v26 }
0x195f   :  { %v1578_v37 = vpack.c.bf16 %v1577_v36, %v1576_v35 }
0x1961   :  { %2829 = vmatmul.mubr.msk.bf16.vlgmr.msra.gmra.mrb[28].mxu1 %vm79_vm3, %v1578_v37  ;;  %v1790_v37 = vld [vmem:[#allocation4 + $0x1b0] sm:$0xff] }
0x1962   :  { %2844 = vmatprep.mubr.msk.bf16.mxu1 %vm3156_vm0, %v3155_v1 }
0x1a34   :  { %v1619_v38 = vpop.f32.mrb[28].mxu1 }
0x1a35   :  { %v2830_v40 = vpop.f32.mrb[29].mxu1 }
0x1a36   :  { %v1622_v41 = vpop.f32.mrb[30].mxu1 }
0x1a37   :  { %v2957_v43 = vpack.i.bf16 %v1622_v41, %v1619_v38  ;;  %v2831_v44 = vpop.f32.mrb[31].mxu1 }
0x1a39   :  { %2958 = vrot.lane.b32.xlu0 %v2957_v43, %s3161_s13  ;;  %v1792_v43 = vld [vmem:[#allocation4 + $0x1c0] sm:$0xff] }
0x1aab   :  { %v2959_v45 = vpop.permute.xlu0 %2958 }
0x1aac   :  { %v2961_v47 = vunpack.i.h.bf16 %v2959_v45  ;;  %v2960_v48 = vunpack.i.l.bf16 %v2959_v45 }
0x1aae   :  { %v1635_v50 = vsel %vm79_vm3, %v1497_v0, %v2961_v47  ;;  %v1634_v51 = vsel %vm79_vm3, %v1494_v62, %v2960_v48 }
0x1aaf   :  { %v1636_v52 = vpack.c.bf16 %v1635_v50, %v1634_v51  ;;  %v1732_v50 = vld [vmem:[#allocation4 + $0x198] sm:$0xff] }
0x1ab1   :  { %2837 = vmatmul.mubr.msk.bf16.vlgmr.msra.gmra.mrb[52].mxu0 %vm182_vm4, %v1636_v52  ;;  %v1733_v52 = vld [vmem:[#allocation4 + $0x1a0] sm:$0xff] }
0x1ab2   :  { %2852 = vmatprep.mubr.msk.bf16.mxu0 %vm182_vm4, %v3327_v12  ;;  %v2992_v12 = vld [vmem:[%s3665_s3 + $0x40] sm:$0xff]  }
0x1ab3   :  { %2841 = vmatpush3.bf16.msra.mxu1 %v2992_v12 }
0x1ab4   :  { %2842 = vmatprep.subr.bf16.mxu1 %v3155_v1 }
0x1ab7   :  { %2843 = vmatpush3.bf16.msra.mxu1 %v2993_v63 }
0x1ab8   :  { %2856 = vmatprep.subr.bf16.mxu1 %v3155_v1 }
0x1b84   :  { %v1688_v42 = vpop.f32.mrb[52].mxu0 }
0x1b85   :  { %v1689_v53 = vadd.f32 %v1688_v42, %v1637_v33  ;;  %v2838_v54 = vpop.f32.mrb[53].mxu0 }
0x1b86   :  { %v1691_v55 = vpop.f32.mrb[54].mxu0 }
0x1b87   :  { %v1692_v56 = vadd.f32 %v1691_v55, %v1638_v34  ;;  %v2839_v57 = vpop.f32.mrb[55].mxu0  ;;  %v1695_v58 = vadd.f32 %v1689_v53, %v3465_v10 }
0x1b89   :  { %v1701_v59 = vsel %vm182_vm4, %v1695_v58, 0.0  ;;  %v1696_v60 = vadd.f32 %v1692_v56, %v3467_v46 }
0x1b8a   :  { %1702 = vadd.xlane.f32.xlu1 %v1701_v59 }
0x1b8b   :  { %v1704_v62 = vsel %vm182_vm4, %v1696_v60, 0.0 }
0x1b8c   :  { %1705 = vadd.xlane.f32.xlu0 %v1704_v62 }
0x1c17   :  { %v1703_v10 = vpop.xlane.xlu1 %1702 }
0x1c18   :  { %v1707_v46 = vmul.f32 0.03125, %v1703_v10 }
0x1c19   :  { %v1706_v0 = vpop.xlane.xlu0 %1705 }
0x1c1a   :  { %v1709_v20 = vsub.f32 %v1695_v58, %v1707_v46  ;;  %v1708_v2 = vmul.f32 0.03125, %v1706_v0 }
0x1c1c   :  { %v1710_v3 = vsub.f32 %v1696_v60, %v1708_v2  ;;  %v1711_v4 = vmul.f32 %v1709_v20, %v1709_v20 }
0x1c1e   :  { %v1713_v5 = vsel %vm182_vm4, %v1711_v4, 0.0  ;;  %v1712_v6 = vmul.f32 %v1710_v3, %v1710_v3 }
0x1c1f   :  { %1714 = vadd.xlane.f32.xlu1 %v1713_v5 }
0x1c20   :  { %v1716_v7 = vsel %vm182_vm4, %v1712_v6, 0.0 }
0x1c21   :  { %1717 = vadd.xlane.f32.xlu0 %v1716_v7 }
0x1c30   :  { %1793 = vrot.lane.b32.xlu1 %v2992_v12, %s3158_s10 }
0x1c37   :  { %1795 = vrot.lane.b32.xlu0 %v2993_v63, %s3158_s10 }
0x1cac   :  { %v1715_v8 = vpop.xlane.xlu1 %1714 }
0x1cad   :  { %v1719_v49 = vmul.f32 0.03125, %v1715_v8 }
0x1cae   :  { %v1718_v9 = vpop.xlane.xlu0 %1717 }
0x1caf   :  { %v1721_v11 = vadd.f32 1e-05, %v1719_v49  ;;  %v1720_v13 = vmul.f32 0.03125, %v1718_v9 }
0x1cb0   :  { %v1794_v14 = vpop.permute.xlu1 %1793 }
0x1cb1   :  { %3068 = vrsqrt.f32 %v1721_v11  ;;  %v1722_v15 = vadd.f32 1e-05, %v1720_v13  ;;  %2848 = vmatprep.subr.bf16.mxu0 %v1794_v14 }
0x1cb2   :  { %2849 = vmatpush3.bf16.msra.mxu0 %v1794_v14  ;;  %v1796_v16 = vpop.permute.xlu0 %1795 }
0x1cb3   :  { %3070 = vrsqrt.f32 %v1722_v15  ;;  %2850 = vmatprep.subr.bf16.mxu0 %v1796_v16 }
0x1cb6   :  { %2851 = vmatpush3.bf16.msra.mxu0 %v1796_v16 }
0x1cb7   :  { %2864 = vmatprep.subr.bf16.mxu0 %v3155_v1 }
0x1cb9   :  { %2853 = vmatmul.mubr.msk.bf16.vlgmr.msra.gmra.mrb[56].mxu0 %vm182_vm4, %v3335_v22 }
0x1cba   :  { %2868 = vmatprep.mubr.msk.bf16.mxu0 %vm3156_vm0, %v3155_v1 }
0x1cbb   :  { %v3069_v17 = vpop.eup %3068 }
0x1cbc   :  { %v1725_v21 = vmul.f32 %v3069_v17, %v1709_v20 }
0x1cbd   :  { %v3071_v23 = vpop.eup %3070 }
0x1cbe   :  { %v1727_v26 = vmul.f32 %v1725_v21, %v1697_v18  ;;  %v1726_v27 = vmul.f32 %v3071_v23, %v1710_v3 }
0x1cc0   :  { %v1728_v30 = vmul.f32 %v1726_v27, %v1698_v25  ;;  %v3542_v31 = vadd.f32 %v1727_v26, %v1699_v28 }
0x1cc2   :  { %v3544_v32 = vadd.f32 %v1728_v30, %v1700_v29 }
0x1cc4   :  { %v1731_v22 = vpack.c.bf16 %v3544_v32, %v3542_v31 }
0x1cc6   :  { %2845 = vmatmul.mubr.msk.bf16.vlgmr.msra.gmra.mrb[32].mxu1 %vm182_vm4, %v1731_v22 }
0x1cc7   :  { %2860 = vmatprep.mubr.msk.bf16.mxu1 %vm3156_vm0, %v3155_v1 }
0x1d8c   :  { %v2854_v35 = vpop.f32.mrb[56].mxu0 }
0x1d8d   :  { %v1833_v36 = vpop.f32.mrb[57].mxu0  ;;  %v1842_v45 = vadd.f32 %v2854_v35, %v1792_v43 }
0x1d8e   :  { %v2855_v24 = vpop.f32.mrb[58].mxu0  ;;  %v1834_v40 = vadd.f32 %v1833_v36, %v1790_v37 }
0x1d8f   :  { %v1836_v38 = vpop.f32.mrb[59].mxu0  ;;  %v3556_v48 = vpack.c.bf16 %v1842_v45, %v1842_v45 }
0x1d90   :  { %v1837_v41 = vadd.f32 %v1836_v38, %v1791_v39 }
0x1d91   :  { %v1857_v55 = vsel %vm79_vm3, %v3556_v48, 0 }
0x1d92   :  { %v3551_v44 = vpack.c.bf16 %v1837_v41, %v1834_v40  ;;  %v3098_v41 = vld [vmem:[#allocation4 + $0x2b8] sm:$0xff] }
0x1d94   :  { %v1854_v47 = vsel %vm79_vm3, %v3551_v44, 0 }
0x1d95   :  { %2857 = vmatpush3.bf16.xpose.msra.mxu1 %v1854_v47  ;;  %v3099_v47 = vld [vmem:[#allocation4 + $0x2c0] sm:$0xff] }
0x1d96   :  { %2858 = vmatprep.subr.bf16.mxu1 %v3155_v1 }
0x1d99   :  { %v1783_v51 = vpop.f32.mrb[32].mxu1 }
0x1d9a   :  { %v2846_v33 = vpop.f32.mrb[33].mxu1  ;;  %v1784_v34 = vadd.f32 %v1783_v51, %v1732_v50 }
0x1d9b   :  { %v1786_v42 = vpop.f32.mrb[34].mxu1 }
0x1d9c   :  { %v1787_v53 = vadd.f32 %v1786_v42, %v1733_v52  ;;  %v2847_v54 = vpop.f32.mrb[35].mxu1 }
0x1d9d   :  { %2859 = vmatpush3.bf16.xpose.msra.mxu1 %v1857_v55 }
0x1d9e   :  { %v1847_v56 = vpack.c.bf16 %v1787_v53, %v1784_v34  ;;  %2880 = vmatprep.subr.bf16.mxu1 %v3155_v1 }
0x1da4   :  { %2861 = vmatmul.mubr.msk.bf16.vlgmr.msra.gmra.mrb[36].mxu1 %vm79_vm3, %v1847_v56 }
0x1da5   :  { %2884 = vmatprep.mubr.msk.bf16.mxu1 %vm3156_vm0, %v3155_v1 }
0x1e77   :  { %v1893_v57 = vpop.f32.mrb[36].mxu1 }
0x1e78   :  { %v1900_v58 = vmul.f32 0.25, %v1893_v57  ;;  %v2862_v59 = vpop.f32.mrb[37].mxu1 }
0x1e79   :  { %v1896_v60 = vpop.f32.mrb[38].mxu1 }
0x1e7a   :  { %v1901_v62 = vmul.f32 0.25, %v1896_v60  ;;  %v2863_v12 = vpop.f32.mrb[39].mxu1  ;;  %v1902_v63 = vadd.f32 %v1900_v58, %v3364_v61 }
0x1e7c   :  { %v1904_v10 = vsel %vm770_vm5, %v1902_v63, -inf  ;;  %v1903_v46 = vadd.f32 %v1901_v62, %v3366_v19 }
0x1e7d   :  { %1905 = vmax.xlane.f32.xlu1 %v1904_v10 }
0x1e7e   :  { %v1907_v0 = vsel %vm770_vm5, %v1903_v46, -inf }
0x1e7f   :  { %1908 = vmax.xlane.f32.xlu0 %v1907_v0 }
0x1e8e   :  { %1929 = vrot.lane.b32.xlu1 %v3551_v44, %s3158_s10 }
0x1f0a   :  { %v1906_v20 = vpop.xlane.xlu1 %1905 }
0x1f0b   :  { %v1910_v2 = vsub.f32 %v1902_v63, %v1906_v20 }
0x1f0c   :  { %v1909_v3 = vpop.xlane.xlu0 %1908 }
0x1f0d   :  { %v1912_v4 = vmul.f32 1.442695, %v1910_v2  ;;  %v1911_v5 = vsub.f32 %v1903_v46, %v1909_v3  ;;  %v2995_v2 = vld [vmem:[#allocation2 + $0x78] sm:$0xff]  }
0x1f0e   :  { %v1930_v6 = vpop.permute.xlu1 %1929 }
0x1f0f   :  { %3072 = vpow2.f32 %v1912_v4  ;;  %v1914_v7 = vmul.f32 1.442695, %v1911_v5  ;;  %2865 = vmatpush3.bf16.msra.mxu0 %v1930_v6 }
0x1f10   :  { %2866 = vmatprep.subr.bf16.mxu0 %v3155_v1 }
0x1f11   :  { %3074 = vpow2.f32 %v1914_v7 }
0x1f19   :  { %v3073_v61 = vpop.eup %3072 }
0x1f1a   :  { %v1916_v19 = vsel %vm770_vm5, %v3073_v61, 0.0 }
0x1f1b   :  { %v3075_v8 = vpop.eup %3074  ;;  %1917 = vadd.xlane.f32.xlu1 %v1916_v19 }
0x1f1c   :  { %v1919_v49 = vsel %vm770_vm5, %v3075_v8, 0.0 }
0x1f1d   :  { %1920 = vadd.xlane.f32.xlu0 %v1919_v49 }
0x1f2c   :  { %1984 = vrot.lane.b32.xlu1 %v3551_v44, %s3157_s9 }
0x1f30   :  { %1986 = vrot.lane.b32.xlu1 %v3556_v48, %s3157_s9 }
0x1f33   :  { %1931 = vrot.lane.b32.xlu0 %v3556_v48, %s3158_s10 }
0x1f37   :  { %1982 = vrot.lane.b32.xlu0 %v1847_v56, %s3157_s9 }
0x1fa8   :  { %v1918_v9 = vpop.xlane.xlu1 %1917 }
0x1fa9   :  { %3076 = vrcp.f32 %v1918_v9 }
0x1faa   :  { %v1921_v11 = vpop.xlane.xlu0 %1920 }
0x1fab   :  { %3078 = vrcp.f32 %v1921_v11 }
0x1fac   :  { %v1985_v21 = vpop.permute.xlu1 %1984 }
0x1fad   :  { %v1992_v25 = vsel %vm79_vm3, %v1985_v21, 0 }
0x1fae   :  { %v1932_v13 = vpop.permute.xlu0 %1931 }
0x1faf   :  { %v1938_v14 = vsel %vm804_vm6, %v1932_v13, 0  ;;  %v2128_v13 = vld [vmem:[#allocation4 + $0x1c8] sm:$0xff] }
0x1fb0   :  { %2867 = vmatpush3.bf16.msra.mxu0 %v1938_v14  ;;  %v1987_v26 = vpop.permute.xlu1 %1986 }
0x1fb1   :  { %2872 = vmatprep.subr.bf16.mxu0 %v3155_v1  ;;  %v1995_v27 = vsel %vm79_vm3, %v1987_v26, 0 }
0x1fb2   :  { %v1983_v28 = vpop.permute.xlu0 %1982 }
0x1fb3   :  { %v3077_v15 = vpop.eup %3076 }
0x1fb4   :  { %v1924_v17 = vmul.f32 %v3077_v15, %v3073_v61  ;;  %v2129_v15 = vld [vmem:[#allocation4 + $0x1d0] sm:$0xff] }
0x1fb5   :  { %v3079_v16 = vpop.eup %3078 }
0x1fb6   :  { %v1925_v18 = vmul.f32 %v3079_v16, %v3075_v8 }
0x1fb8   :  { %v1926_v23 = vpack.c.bf16 %v1925_v18, %v1924_v17 }
0x1fba   :  { %2869 = vmatmul.mubr.msk.bf16.vlgmr.msra.gmra.mrb[60].mxu0 %vm770_vm5, %v1926_v23 }
0x1fbb   :  { %2873 = vmatpush3.bf16.xpose.msra.mxu0 %v1992_v25  ;;  %2876 = vmatprep.mubr.msk.bf16.mxu0 %vm3156_vm0, %v3155_v1 }
0x1fbc   :  { %2874 = vmatprep.subr.bf16.mxu0 %v3155_v1 }
0x1fc3   :  { %2875 = vmatpush3.bf16.xpose.msra.mxu0 %v1995_v27 }
0x1fc4   :  { %2896 = vmatprep.subr.bf16.mxu0 %v3155_v1 }
0x1fca   :  { %2877 = vmatmul.mubr.msk.bf16.vlgmr.msra.gmra.mrb[64].mxu0 %vm79_vm3, %v1983_v28 }
0x1fcb   :  { %2900 = vmatprep.mubr.msk.bf16.mxu0 %vm3156_vm0, %v3155_v1 }
0x208d   :  { %v3592_v29 = vpop.f32.mrb[60].mxu0 }
0x208e   :  { %v2870_v30 = vpop.f32.mrb[61].mxu0 }
0x208f   :  { %v3594_v22 = vpop.f32.mrb[62].mxu0 }
0x2090   :  { %v2871_v35 = vpop.f32.mrb[63].mxu0 }
0x209d   :  { %v2031_v36 = vpop.f32.mrb[64].mxu0 }
0x209e   :  { %v2038_v37 = vmul.f32 0.25, %v2031_v36  ;;  %v2878_v39 = vpop.f32.mrb[65].mxu0 }
0x209f   :  { %v2034_v24 = vpop.f32.mrb[66].mxu0 }
0x20a0   :  { %v2039_v38 = vmul.f32 0.25, %v2034_v24  ;;  %v2879_v40 = vpop.f32.mrb[67].mxu0  ;;  %v2040_v43 = vadd.f32 %v3098_v41, %v2038_v37  ;;  %v2998_v41 = vld [vmem:[#allocation2 + $0x80] sm:$0xff]  }
0x20a1   :  { %v2997_v40 = vld [vmem:[%s3665_s3 + $0x58] sm:$0xff]  }
0x20a2   :  { %v2042_v45 = vsel %vm770_vm5, %v2040_v43, -inf  ;;  %v2041_v50 = vadd.f32 %v3099_v47, %v2039_v38  ;;  %v3001_v47 = vld [vmem:[#allocation2 + $0x98] sm:$0xff]  }
0x20a3   :  { %2043 = vmax.xlane.f32.xlu1 %v2042_v45  ;;  %v3000_v45 = vld [vmem:[#allocation2 + $0x90] sm:$0xff]  }
0x20a4   :  { %v2045_v51 = vsel %vm770_vm5, %v2041_v50, -inf }
0x20a5   :  { %2046 = vmax.xlane.f32.xlu0 %v2045_v51  ;;  %v3003_v51 = vld [vmem:[#allocation2 + $0xa8] sm:$0xff]  }
0x2130   :  { %v2044_v52 = vpop.xlane.xlu1 %2043 }
0x2131   :  { %v2048_v33 = vsub.f32 %v2040_v43, %v2044_v52  ;;  %v2999_v43 = vld [vmem:[#allocation2 + $0x88] sm:$0xff]  }
0x2132   :  { %v2047_v42 = vpop.xlane.xlu0 %2046 }
0x2133   :  { %v2050_v34 = vmul.f32 1.442695, %v2048_v33  ;;  %v2049_v53 = vsub.f32 %v2041_v50, %v2047_v42  ;;  %v3002_v50 = vld [vmem:[#allocation2 + $0xa0] sm:$0xff]  }
0x2135   :  { %3080 = vpow2.f32 %v2050_v34  ;;  %v2052_v54 = vmul.f32 1.442695, %v2049_v53 }
0x2137   :  { %3082 = vpow2.f32 %v2052_v54 }
0x213f   :  { %v3081_v55 = vpop.eup %3080 }
0x2140   :  { %v2054_v56 = vsel %vm770_vm5, %v3081_v55, 0.0 }
0x2141   :  { %v3083_v57 = vpop.eup %3082  ;;  %2055 = vadd.xlane.f32.xlu0 %v2054_v56 }
0x2142   :  { %v2057_v58 = vsel %vm770_vm5, %v3083_v57, 0.0 }
0x2143   :  { %2058 = vadd.xlane.f32.xlu1 %v2057_v58 }
0x2154   :  { %2067 = vrot.lane.b32.xlu1 %v3556_v48, %s3159_s11 }
0x2157   :  { %2065 = vrot.lane.b32.xlu0 %v3551_v44, %s3159_s11  ;;  %v2994_v44 = vld [vmem:[#allocation2 + $0x70] sm:$0xff]  }
0x21ce   :  { %v2056_v59 = vpop.xlane.xlu0 %2055 }
0x21cf   :  { %3084 = vrcp.f32 %v2056_v59  ;;  %v2189_v59 = vld [vmem:[#allocation4 + $0x1e8] sm:$0xff] }
0x21d0   :  { %v2059_v60 = vpop.xlane.xlu1 %2058 }
0x21d1   :  { %3086 = vrcp.f32 %v2059_v60 }
0x21d2   :  { %v2066_v62 = vpop.permute.xlu0 %2065 }
0x21d3   :  { %2881 = vmatpush3.bf16.msra.mxu1 %v2066_v62 }
0x21d4   :  { %v2068_v12 = vpop.permute.xlu1 %2067  ;;  %2882 = vmatprep.subr.bf16.mxu1 %v3155_v1 }
0x21d5   :  { %v2074_v63 = vsel %vm804_vm6, %v2068_v12, 0  ;;  %v2190_v12 = vld [vmem:[#allocation4 + $0x1f8] sm:$0xff] }
0x21d7   :  { %2883 = vmatpush3.bf16.msra.mxu1 %v2074_v63  ;;  %v2191_v63 = vld [vmem:[#allocation4 + $0x200] sm:$0xff] }
0x21d8   :  { %2888 = vmatprep.subr.bf16.mxu1 %v3155_v1 }
0x21d9   :  { %v3085_v10 = vpop.eup %3084 }
0x21da   :  { %v2062_v48 = vmul.f32 %v3085_v10, %v3081_v55 }
0x21db   :  { %v3087_v46 = vpop.eup %3086 }
0x21dc   :  { %v2063_v0 = vmul.f32 %v3087_v46, %v3083_v57  ;;  %v2188_v57 = vld [vmem:[#allocation4 + $0x1e0] sm:$0xff] }
0x21de   :  { %v2064_v20 = vpack.c.bf16 %v2063_v0, %v2062_v48 }
0x21e0   :  { %2885 = vmatmul.mubr.msk.bf16.vlgmr.msra.gmra.mrb[40].mxu1 %vm770_vm5, %v2064_v20  ;;  %v3004_v20 = vld [vmem:[#allocation2 + $0xb0] sm:$0xff]  }
0x21e1   :  { %2892 = vmatprep.mubr.msk.bf16.mxu1 %vm3156_vm0, %v3155_v1  ;;  %2889 = vmatpush3.bf16.msra.mxu1 %v2994_v44  ;;  %v3005_v44 = vld [vmem:[#allocation2 + $0xb8] sm:$0xff]  }
0x21e2   :  { %2890 = vmatprep.subr.bf16.mxu1 %v3155_v1 }
0x21e5   :  { %2891 = vmatpush3.bf16.msra.mxu1 %v2995_v2  ;;  %v2223_v2 = vld [vmem:[#allocation4 + $0x210] sm:$0xff] }
0x21e6   :  { %2904 = vmatprep.subr.bf16.mxu1 %v3155_v1 }
0x22b3   :  { %v2110_v3 = vpop.f32.mrb[40].mxu1 }
0x22b4   :  { %v2886_v4 = vpop.f32.mrb[41].mxu1 }
0x22b5   :  { %v2113_v5 = vpop.f32.mrb[42].mxu1  ;;  %v2224_v4 = vld [vmem:[#allocation4 + $0x218] sm:$0xff] }
0x22b6   :  { %v2962_v6 = vpack.i.bf16 %v2113_v5, %v2110_v3  ;;  %v2887_v7 = vpop.f32.mrb[43].mxu1 }
0x22b8   :  { %2963 = vrot.lane.b32.xlu1 %v2962_v6, %s3161_s13 }
0x232a   :  { %v2964_v61 = vpop.permute.xlu1 %2963 }
0x232b   :  { %v2966_v19 = vunpack.i.h.bf16 %v2964_v61  ;;  %v2965_v8 = vunpack.i.l.bf16 %v2964_v61 }
0x232d   :  { %v2126_v49 = vsel %vm79_vm3, %v3594_v22, %v2966_v19  ;;  %v2125_v9 = vsel %vm79_vm3, %v3592_v29, %v2965_v8 }
0x232e   :  { %v2127_v11 = vpack.c.bf16 %v2126_v49, %v2125_v9 }
0x2330   :  { %2893 = vmatmul.mubr.msk.bf16.vlgmr.msra.gmra.mrb[44].mxu1 %vm182_vm4, %v2127_v11  ;;  %v2284_v11 = vld [vmem:[#allocation4 + $0x228] sm:$0xff] }
0x2331   :  { %2920 = vmatprep.mubr.msk.bf16.mxu1 %vm3156_vm0, %v3155_v1  ;;  %2905 = vmatpush3.bf16.msra.mxu1 %v2998_v41 }
0x2332   :  { %2906 = vmatprep.subr.bf16.mxu1 %v3155_v1 }
0x2335   :  { %2907 = vmatpush3.bf16.msra.mxu1 %v2999_v43 }
0x2336   :  { %2908 = vmatprep.subr.bf16.mxu1 %v3155_v1 }
0x2339   :  { %2909 = vmatpush3.bf16.msra.mxu1 %v3000_v45 }
0x233a   :  { %2910 = vmatprep.subr.bf16.mxu1 %v3155_v1 }
0x233d   :  { %2911 = vmatpush3.bf16.msra.mxu1 %v3001_v47 }
0x233e   :  { %2912 = vmatprep.subr.bf16.mxu1 %v3155_v1 }
0x2341   :  { %2913 = vmatpush3.bf16.msra.mxu1 %v3002_v50 }
0x2342   :  { %2914 = vmatprep.subr.bf16.mxu1 %v3155_v1 }
0x2345   :  { %2915 = vmatpush3.bf16.msra.mxu1 %v3003_v51 }
0x2346   :  { %2916 = vmatprep.subr.bf16.mxu1 %v3155_v1 }
0x2349   :  { %2917 = vmatpush3.bf16.msra.mxu1 %v3004_v20 }
0x234a   :  { %2918 = vmatprep.subr.bf16.mxu1 %v3155_v1 }
0x234d   :  { %2919 = vmatpush3.bf16.msra.mxu1 %v3005_v44 }
0x2403   :  { %v2179_v14 = vpop.f32.mrb[44].mxu1 }
0x2404   :  { %v2180_v16 = vadd.f32 %v2179_v14, %v2128_v13  ;;  %v2894_v17 = vpop.f32.mrb[45].mxu1  ;;  %v2285_v14 = vld [vmem:[#allocation4 + $0x230] sm:$0xff] }
0x2405   :  { %v2182_v18 = vpop.f32.mrb[46].mxu1 }
0x2406   :  { %v2183_v21 = vadd.f32 %v2182_v18, %v2129_v15  ;;  %v2895_v23 = vpop.f32.mrb[47].mxu1  ;;  %v2186_v25 = vadd.f32 %v2180_v16, %v3542_v31 }
0x2408   :  { %v2192_v26 = vsel %vm182_vm4, %v2186_v25, 0.0  ;;  %v2187_v27 = vadd.f32 %v2183_v21, %v3544_v32  ;;  %v2996_v32 = vld [vmem:[%s3665_s3 + $0x50] sm:$0xff]  }
0x2409   :  { %2193 = vadd.xlane.f32.xlu0 %v2192_v26  ;;  %2897 = vmatpush3.bf16.msra.mxu0 %v2996_v32  ;;  %v3007_v32 = vld [vmem:[%s3663_s1 + $0x10] sm:$0xff]  }
0x240a   :  { %v2195_v28 = vsel %vm182_vm4, %v2187_v27, 0.0  ;;  %2898 = vmatprep.subr.bf16.mxu0 %v3155_v1 }
0x240b   :  { %2196 = vadd.xlane.f32.xlu1 %v2195_v28 }
0x240d   :  { %2899 = vmatpush3.bf16.msra.mxu0 %v2997_v40 }
0x240e   :  { %2924 = vmatprep.subr.bf16.mxu0 %v3155_v1 }
0x2496   :  { %v2194_v29 = vpop.xlane.xlu0 %2193 }
0x2497   :  { %v2198_v30 = vmul.f32 0.03125, %v2194_v29 }
0x2498   :  { %v2197_v22 = vpop.xlane.xlu1 %2196 }
0x2499   :  { %v2200_v35 = vsub.f32 %v2186_v25, %v2198_v30  ;;  %v2199_v36 = vmul.f32 0.03125, %v2197_v22 }
0x249b   :  { %v2201_v37 = vsub.f32 %v2187_v27, %v2199_v36  ;;  %v2202_v39 = vmul.f32 %v2200_v35, %v2200_v35 }
0x249d   :  { %v2204_v24 = vsel %vm182_vm4, %v2202_v39, 0.0  ;;  %v2203_v38 = vmul.f32 %v2201_v37, %v2201_v37 }
0x249e   :  { %2205 = vadd.xlane.f32.xlu0 %v2204_v24 }
0x249f   :  { %v2207_v31 = vsel %vm182_vm4, %v2203_v38, 0.0 }
0x24a2   :  { %2208 = vadd.xlane.f32.xlu0 %v2207_v31  ;;  %v3006_v31 = vld [vmem:[%s3663_s1 + $0x8] sm:$0xff]  }
0x252b   :  { %v2206_v52 = vpop.xlane.xlu0 %2205 }
0x252c   :  { %v2210_v33 = vmul.f32 0.03125, %v2206_v52  ;;  %v2377_v52 = vld [vmem:[#allocation4 + $0x240] sm:$0xff] }
0x252e   :  { %v2212_v42 = vadd.f32 1e-05, %v2210_v33 }
0x252f   :  { %v2209_v34 = vpop.xlane.xlu0 %2208 }
0x2530   :  { %3088 = vrsqrt.f32 %v2212_v42  ;;  %v2211_v53 = vmul.f32 0.03125, %v2209_v34  ;;  %v2378_v34 = vld [vmem:[#allocation4 + $0x248] sm:$0xff] }
0x2532   :  { %v2213_v54 = vadd.f32 1e-05, %v2211_v53 }
0x2534   :  { %3090 = vrsqrt.f32 %v2213_v54  ;;  %v2379_v54 = vld [vmem:[#allocation4 + $0x258] sm:$0xff] }
0x253a   :  { %v3089_v55 = vpop.eup %3088 }
0x253b   :  { %v2216_v56 = vmul.f32 %v3089_v55, %v2200_v35  ;;  %v2380_v55 = vld [vmem:[#allocation4 + $0x260] sm:$0xff] }
0x253d   :  { %v2218_v60 = vmul.f32 %v2216_v56, %v2188_v57 }
0x253e   :  { %v3091_v58 = vpop.eup %3090 }
0x253f   :  { %v2217_v62 = vmul.f32 %v3091_v58, %v2201_v37  ;;  %v2220_v46 = vadd.f32 %v2218_v60, %v2190_v12  ;;  %v2416_v60 = vld [vmem:[#allocation4 + $0x288] sm:$0xff]  ;;  %v2417_v12 = vld [vmem:[#allocation4 + $0x290] sm:$0xff] }
0x2541   :  { %v2219_v10 = vmul.f32 %v2217_v62, %v2189_v59 }
0x2543   :  { %v2221_v48 = vadd.f32 %v2219_v10, %v2191_v63 }
0x2545   :  { %v2222_v0 = vpack.c.bf16 %v2221_v48, %v2220_v46 }
0x2547   :  { %2901 = vmatmul.mubr.msk.bf16.vlgmr.msra.gmra.mrb[68].mxu0 %vm182_vm4, %v2222_v0 }
0x2548   :  { %2928 = vmatprep.mubr.msk.bf16.mxu0 %vm3156_vm0, %v3155_v1  ;;  %2925 = vmatpush3.bf16.msra.mxu0 %v3006_v31 }
0x2549   :  { %2926 = vmatprep.subr.bf16.mxu0 %v3155_v1 }
0x254c   :  { %2927 = vmatpush3.bf16.msra.mxu0 %v3007_v32 }
0x261a   :  { %v2274_v3 = vpop.f32.mrb[68].mxu0 }
0x261b   :  { %v2275_v5 = vadd.f32 %v2274_v3, %v2223_v2  ;;  %v2902_v6 = vpop.f32.mrb[69].mxu0 }
0x261c   :  { %v2277_v7 = vpop.f32.mrb[70].mxu0 }
0x261d   :  { %v2278_v61 = vadd.f32 %v2277_v7, %v2224_v4  ;;  %v2903_v19 = vpop.f32.mrb[71].mxu0  ;;  %v2281_v8 = vmax.f32 %v2275_v5, 0.0 }
0x261f   :  { %v2282_v49 = vmax.f32 %v2278_v61, 0.0 }
0x2621   :  { %v2283_v9 = vpack.c.bf16 %v2282_v49, %v2281_v8 }
0x2623   :  { %2921 = vmatmul.mubr.bf16.vlgmr.msra.gmra.mrb[48].mxu1 %v2283_v9 }
0x26f6   :  { %v2368_v13 = vpop.f32.mrb[48].mxu1 }
0x26f7   :  { %v2369_v15 = vadd.f32 %v2368_v13, %v2284_v11  ;;  %v2922_v16 = vpop.f32.mrb[49].mxu1 }
0x26f8   :  { %v2371_v17 = vpop.f32.mrb[50].mxu1 }
0x26f9   :  { %v2372_v18 = vadd.f32 %v2371_v17, %v2285_v14  ;;  %v2923_v21 = vpop.f32.mrb[51].mxu1  ;;  %v2375_v23 = vadd.f32 %v2369_v15, %v2220_v46 }
0x26fb   :  { %v2381_v25 = vsel %vm182_vm4, %v2375_v23, 0.0  ;;  %v2376_v26 = vadd.f32 %v2372_v18, %v2221_v48 }
0x26fc   :  { %2382 = vadd.xlane.f32.xlu1 %v2381_v25 }
0x26fd   :  { %v2384_v27 = vsel %vm182_vm4, %v2376_v26, 0.0 }
0x26fe   :  { %2385 = vadd.xlane.f32.xlu0 %v2384_v27 }
0x2789   :  { %v2383_v28 = vpop.xlane.xlu1 %2382 }
0x278a   :  { %v2387_v29 = vmul.f32 0.03125, %v2383_v28 }
0x278b   :  { %v2386_v30 = vpop.xlane.xlu0 %2385 }
0x278c   :  { %v2389_v22 = vsub.f32 %v2375_v23, %v2387_v29  ;;  %v2388_v35 = vmul.f32 0.03125, %v2386_v30 }
0x278e   :  { %v2390_v36 = vsub.f32 %v2376_v26, %v2388_v35  ;;  %v2391_v37 = vmul.f32 %v2389_v22, %v2389_v22 }
0x2790   :  { %v2393_v39 = vsel %vm182_vm4, %v2391_v37, 0.0  ;;  %v2392_v24 = vmul.f32 %v2390_v36, %v2390_v36 }
0x2791   :  { %2394 = vadd.xlane.f32.xlu1 %v2393_v39 }
0x2792   :  { %v2396_v38 = vsel %vm182_vm4, %v2392_v24, 0.0 }
0x2793   :  { %2397 = vadd.xlane.f32.xlu0 %v2396_v38 }
0x281e   :  { %v2395_v40 = vpop.xlane.xlu1 %2394 }
0x281f   :  { %v2399_v41 = vmul.f32 0.03125, %v2395_v40 }
0x2820   :  { %v2398_v43 = vpop.xlane.xlu0 %2397 }
0x2821   :  { %v2401_v45 = vadd.f32 1e-05, %v2399_v41  ;;  %v2400_v47 = vmul.f32 0.03125, %v2398_v43 }
0x2823   :  { %3092 = vrsqrt.f32 %v2401_v45  ;;  %v2402_v50 = vadd.f32 1e-05, %v2400_v47 }
0x2825   :  { %3094 = vrsqrt.f32 %v2402_v50 }
0x282d   :  { %v3093_v51 = vpop.eup %3092 }
0x282e   :  { %v2405_v33 = vmul.f32 %v3093_v51, %v2389_v22 }
0x282f   :  { %v3095_v42 = vpop.eup %3094 }
0x2830   :  { %v2407_v53 = vmul.f32 %v2405_v33, %v2377_v52  ;;  %v2406_v1 = vmul.f32 %v3095_v42, %v2390_v36 }
0x2832   :  { %v2408_v56 = vmul.f32 %v2406_v1, %v2378_v34  ;;  %v2409_v57 = vadd.f32 %v2407_v53, %v2379_v54 }
0x2834   :  { %v2410_v58 = vadd.f32 %v2408_v56, %v2380_v55 }
0x2836   :  { %v2415_v59 = vpack.c.bf16 %v2410_v58, %v2409_v57 }
0x2838   :  { %2929 = vmatmul.mubr.msk.bf16.vlgmr.msra.gmra.mrb[72].mxu0 %vm182_vm4, %v2415_v59 }
0x290b   :  { %v2467_v62 = vpop.f32.mrb[72].mxu0 }
0x290c   :  { %v2468_v63 = vadd.f32 %v2467_v62, %v2416_v60  ;;  %v2930_v10 = vpop.f32.mrb[73].mxu0 }
0x290d   :  { %v2470_v46 = vpop.f32.mrb[74].mxu0 }
0x290e   :  { %2474 = vst [vmem:[%s3668_s6] sm:$0xff] %v2468_v63  ;;  %v2471_v48 = vadd.f32 %v2470_v46, %v2417_v12  ;;  %v2931_v0 = vpop.f32.mrb[75].mxu0 }
0x2910   :  { %2475 = vst [vmem:[%s3668_s6 + $0x8] sm:$0xff] %v2471_v48 }
0x2911   :  { %2480 = vsyncpa [#allocation3], 1 }
0x2912   :  { %2481 = vsyncpa [#allocation5], 1 }

</bundles_post_ra>
